<compile_context>
chip_gen: v5e
topology: v5e:2x2
jax: 0.10.0
libtpu: 0.0.40
codegen_flags: <defaults>
</compile_context>

<pallas_src>
import functools

import jax
import jax.numpy as jnp
from jax.experimental import pallas as pl
from jax.experimental.pallas import tpu as pltpu

EPS = 1e-5  # PyTorch LayerNorm default eps


def _round_up(x, m):
    return (x + m - 1) // m * m


def _layernorm(x, gamma, beta, true_dim, pad_cols):
    """Centered LayerNorm over the last dim (f32 accumulation).

    The trailing `pad_cols` lanes of x are exactly zero; their (0 - mu)^2
    contribution to the centered sum is removed analytically, so the result
    equals LayerNorm over the first `true_dim` lanes only.
    """
    inv_n = 1.0 / float(true_dim)
    mu = jnp.sum(x, axis=-1, keepdims=True) * inv_n
    d = x - mu
    ss = jnp.sum(d * d, axis=-1, keepdims=True) - float(pad_cols) * mu * mu
    var = jnp.maximum(ss * inv_n, 0.0)
    return d * jax.lax.rsqrt(var + EPS) * gamma + beta


def conformer_conv_kernel(xm_ref, xh_ref, ln1_g_ref, ln1_b_ref,
                          w1o_ref, b1o_ref, w1g_ref, b1g_ref,
                          wdw_ref, bdw_ref, ln2_g_ref, ln2_b_ref,
                          w2_ref, b2_ref, o_ref, *,
                          dim, out_dim, d_pad_cols, c_pad_cols,
                          seq_len, tile_n, lorder, rorder, compute_dtype):
    k_size = lorder + rorder + 1
    t = pl.program_id(1)

    # (TN + halo, D_pad) window assembled from two blocks of the same HBM array
    # (main tile rows + trailing halo rows) — no overlapping copy of x in HBM.
    xw = jnp.concatenate([xm_ref[0], xh_ref[0]], axis=0).astype(jnp.float32)
    tn_ext = xw.shape[0]

    # --- LayerNorm(dim) ---
    xn = _layernorm(xw, ln1_g_ref[...], ln1_b_ref[...], dim, d_pad_cols)

    # --- Linear(dim, 2*out_dim) + GLU (weights pre-split into out/gate halves) ---
    xnc = xn.astype(compute_dtype)
    out = jnp.dot(xnc, w1o_ref[...], preferred_element_type=jnp.float32) + b1o_ref[...]
    gate = jnp.dot(xnc, w1g_ref[...], preferred_element_type=jnp.float32) + b1g_ref[...]
    g = out * jax.nn.sigmoid(gate)                       # (TN+halo, C_pad) f32

    # Zero rows outside the true sequence: reproduces the conv's zero padding and
    # neutralizes tile-remainder / halo rows past the sequence end.
    row = jax.lax.broadcasted_iota(jnp.int32, (tn_ext, 1), 0)
    orig_t = t * tile_n + row - lorder                   # original time per row
    g = jnp.where((orig_t >= 0) & (orig_t < seq_len), g, 0.0).astype(compute_dtype)

    # --- Depthwise Conv1d over time: y[i] = bias + sum_k w[k] * g[i + k] ---
    # Shifts are XLU rotations; multiply-adds only on the TN output rows
    # (aligned [:TN] slices); accumulation stays f32 (wdw is f32).
    acc = g[:tile_n, :] * wdw_ref[0:1, :]
    for k in range(1, k_size):                           # static, small K
        shifted = pltpu.roll(g, shift=tn_ext - k, axis=0)     # shifted[i] = g[i+k]
        acc = acc + shifted[:tile_n, :] * wdw_ref[k:k + 1, :]
    y = acc + bdw_ref[...]                               # (TN, C_pad) f32

    # --- LayerNorm(out_dim) + Swish ---
    yn = _layernorm(y, ln2_g_ref[...], ln2_b_ref[...], out_dim, c_pad_cols)
    sw = yn * jax.nn.sigmoid(yn)

    # --- Linear(out_dim, out_dim); Dropout(p=0.0) is the identity ---
    o = jnp.dot(sw.astype(compute_dtype), w2_ref[...],
                preferred_element_type=jnp.float32) + b2_ref[...]
    o_ref[0] = o.astype(o_ref.dtype)


def conformer_conv_module(x, params, *, lorder=1, rorder=1,
                          tile_n=504, compute_dtype=jnp.bfloat16,
                          out_dtype=None):
    """x: (B, N, dim) -> (B, N, output_dim); matches the PyTorch module forward."""
    B, N, D = x.shape
    C = params["w2"].shape[0]
    K = params["wdw"].shape[0]
    assert K == lorder + rorder + 1 and lorder >= 0 and rorder >= 0

    f32 = jnp.float32
    out_dtype = x.dtype if out_dtype is None else out_dtype
    io_dtype = jnp.dtype(compute_dtype)        # ship x in the compute dtype

    D_pad = _round_up(D, 128)
    C_pad = _round_up(C, 128)

    # Tile selection: sublane granule (16 for bf16 I/O, 8 for f32), a granule-
    # aligned halo covering the conv footprint, and (for large tiles, when the
    # halo divides 256) TN + halo aligned to the 256-tall MXU pass.
    gran = 8 * 4 // io_dtype.itemsize
    halo = max(gran, _round_up(lorder + rorder, gran))
    TN = max(halo, min(_round_up(tile_n, halo), _round_up(N, halo)))
    if 256 % halo == 0 and TN + halo > 256:
        TN = max(256 - halo, (TN + halo) // 256 * 256 - halo)
    T = -(-N // TN)
    N_pad = T * TN
    TN_EXT = TN + halo

    def pad2(a, rows, cols, dtype=f32):
        a = jnp.asarray(a, f32)
        a = jnp.pad(a, ((0, rows - a.shape[0]), (0, cols - a.shape[1])))
        return a.astype(dtype)

    w1, b1 = params["w1"], params["b1"]
    prepped = dict(
        ln1_g=pad2(params["ln1_g"], 1, D_pad),
        ln1_b=pad2(params["ln1_b"], 1, D_pad),
        w1o=pad2(w1[:, :C], D_pad, C_pad, compute_dtype),
        b1o=pad2(b1[:, :C], 1, C_pad),
        w1g=pad2(w1[:, C:], D_pad, C_pad, compute_dtype),
        b1g=pad2(b1[:, C:], 1, C_pad),
        wdw=pad2(params["wdw"], K, C_pad),
        bdw=pad2(params["bdw"], 1, C_pad),
        ln2_g=pad2(params["ln2_g"], 1, C_pad),
        ln2_b=pad2(params["ln2_b"], 1, C_pad),
        w2=pad2(params["w2"], C_pad, C_pad, compute_dtype),
        b2=pad2(params["b2"], 1, C_pad),
    )
    param_order = ["ln1_g", "ln1_b", "w1o", "b1o", "w1g", "b1g",
                   "wdw", "bdw", "ln2_g", "ln2_b", "w2", "b2"]
    param_arrays = [prepped[k] for k in param_order]

    # Time-pad (front conv padding + tile remainder + trailing halo) and lane-pad.
    # This is the ONLY HBM copy of the input; no per-tile windowed copy exists.
    x_p = jnp.pad(x.astype(io_dtype),
                  ((0, 0),
                   (lorder, (N_pad - N) + (halo - lorder)),
                   (0, D_pad - D)))                       # (B, N_pad + halo, D_pad)

    kernel = functools.partial(
        conformer_conv_kernel,
        dim=D, out_dim=C, d_pad_cols=D_pad - D, c_pad_cols=C_pad - C,
        seq_len=N, tile_n=TN, lorder=lorder, rorder=rorder,
        compute_dtype=compute_dtype)

    halo_blocks_per_tile = TN // halo                     # TN is a multiple of halo
    main_spec = pl.BlockSpec((1, TN, D_pad), lambda b, t: (b, t, 0))
    halo_spec = pl.BlockSpec((1, halo, D_pad),
                             lambda b, t: (b, (t + 1) * halo_blocks_per_tile, 0))

    def const_spec(a):
        shape = a.shape
        return pl.BlockSpec(shape, lambda b, t: (0,) * len(shape))

    # Generation-aware VMEM budget: double-buffered input/halo/output blocks,
    # double-buffered params, intermediate headroom; capped at 75% of physical
    # VMEM (48 MiB on v7x, ~96 MiB on v5e/v6e).
    blk_bytes = (2 * (TN * D_pad + halo * D_pad) * io_dtype.itemsize
                 + 2 * TN * C_pad * jnp.dtype(out_dtype).itemsize)
    par_bytes = 2 * sum(int(a.size) * a.dtype.itemsize for a in param_arrays)
    work_bytes = 8 * TN_EXT * max(D_pad, C_pad) * 4
    try:
        phys_vmem = int(getattr(pltpu.get_tpu_info(), "vmem_capacity_bytes",
                                64 * 2 ** 20))
    except Exception:
        phys_vmem = 64 * 2 ** 20
    vmem_limit = int(min(phys_vmem * 3 // 4,
                         max(blk_bytes + par_bytes + work_bytes, 32 * 2 ** 20)))

    out_full = pl.pallas_call(
        kernel,
        out_shape=jax.ShapeDtypeStruct((B, N_pad, C_pad), out_dtype),
        grid=(B, T),
        in_specs=[main_spec, halo_spec] + [const_spec(a) for a in param_arrays],
        out_specs=pl.BlockSpec((1, TN, C_pad), lambda b, t: (b, t, 0)),
        compiler_params=pltpu.CompilerParams(
            dimension_semantics=("parallel", "parallel"),
            vmem_limit_bytes=vmem_limit),
    )(x_p, x_p, *param_arrays)

    return out_full[:, :N, :C]


# ----------------------------- pure-JAX reference -----------------------------

def _layernorm_ref(x, gamma, beta):
    mu = jnp.mean(x, axis=-1, keepdims=True)
    var = jnp.mean((x - mu) ** 2, axis=-1, keepdims=True)
    return (x - mu) * jax.lax.rsqrt(var + EPS) * gamma + beta


def reference(x, p, *, lorder=1, rorder=1):
    xn = _layernorm_ref(x, p["ln1_g"], p["ln1_b"])
    h = xn @ p["w1"] + p["b1"]
    C = p["w2"].shape[0]
    g = h[..., :C] * jax.nn.sigmoid(h[..., C:])
    gp = jnp.pad(g, ((0, 0), (lorder, rorder), (0, 0)))
    N = x.shape[1]
    K = p["wdw"].shape[0]
    y = jnp.zeros_like(g) + p["bdw"]
    for k in range(K):
        y = y + gp[:, k:k + N, :] * p["wdw"][k]
    yn = _layernorm_ref(y, p["ln2_g"], p["ln2_b"])
    s = yn * jax.nn.sigmoid(yn)
    return s @ p["w2"] + p["b2"]


if __name__ == "__main__":
    B, N, D, C = 2, 200, 48, 64          # batch, seq, dim, output_dim
    lorder, rorder = 1, 1
    K = lorder + rorder + 1

    key = jax.random.PRNGKey(0)
    ks = jax.random.split(key, 10)
    params = {
        "ln1_g": 1.0 + 0.1 * jax.random.normal(ks[7], (1, D), jnp.float32),
        "ln1_b": 0.1 * jax.random.normal(ks[8], (1, D), jnp.float32),
        "w1": jax.random.normal(ks[0], (D, 2 * C), jnp.float32) * 0.1,
        "b1": jax.random.normal(ks[1], (1, 2 * C), jnp.float32) * 0.1,
        "wdw": jax.random.normal(ks[2], (K, C), jnp.float32) * 0.2,
        "bdw": jax.random.normal(ks[3], (1, C), jnp.float32) * 0.1,
        "ln2_g": 1.0 + 0.1 * jax.random.normal(ks[9], (1, C), jnp.float32),
        "ln2_b": jnp.zeros((1, C), jnp.float32),
        "w2": jax.random.normal(ks[4], (C, C), jnp.float32) * 0.1,
        "b2": jax.random.normal(ks[5], (1, C), jnp.float32) * 0.1,
    }
    x = jax.random.normal(ks[6], (B, N, D), jnp.float32)

    ref = reference(x, params, lorder=lorder, rorder=rorder)

    # Multi-tile f32 path (tight check; exercises halo blocks + boundary masks).
    out_f32 = conformer_conv_module(x, params, lorder=lorder, rorder=rorder,
                                    tile_n=64, compute_dtype=jnp.float32)
    jax.block_until_ready(out_f32)
    assert out_f32.shape == (B, N, C)
    assert jnp.allclose(out_f32, ref, atol=1e-3, rtol=1e-3), "f32 mismatch vs reference"

    # Default config: bf16 I/O + bf16 MXU operands with f32 accumulation.
    out_bf16 = conformer_conv_module(x, params, lorder=lorder, rorder=rorder,
                                     compute_dtype=jnp.bfloat16)
    jax.block_until_ready(out_bf16)
    assert out_bf16.shape == (B, N, C)
    assert bool(jnp.all(jnp.isfinite(out_bf16)))
    assert jnp.allclose(out_bf16, ref, atol=1e-1, rtol=1e-1), "bf16 mismatch vs reference"

    print("KERNEL_OK")
</pallas_src>

<mosaic_0001>
module attributes {stable_mosaic.version = 11 : i64} {
  func.func @conformer_conv_kernel(%arg0: i32, %arg1: i32, %arg2: memref<1x64x128xf32, #tpu.memory_space<vmem>>, %arg3: memref<1x8x128xf32, #tpu.memory_space<vmem>>, %arg4: memref<1x128xf32, #tpu.memory_space<vmem>>, %arg5: memref<1x128xf32, #tpu.memory_space<vmem>>, %arg6: memref<128x128xf32, #tpu.memory_space<vmem>>, %arg7: memref<1x128xf32, #tpu.memory_space<vmem>>, %arg8: memref<128x128xf32, #tpu.memory_space<vmem>>, %arg9: memref<1x128xf32, #tpu.memory_space<vmem>>, %arg10: memref<3x128xf32, #tpu.memory_space<vmem>>, %arg11: memref<1x128xf32, #tpu.memory_space<vmem>>, %arg12: memref<1x128xf32, #tpu.memory_space<vmem>>, %arg13: memref<1x128xf32, #tpu.memory_space<vmem>>, %arg14: memref<128x128xf32, #tpu.memory_space<vmem>>, %arg15: memref<1x128xf32, #tpu.memory_space<vmem>>, %arg16: memref<1x64x128xf32, #tpu.memory_space<vmem>>) attributes {dimension_semantics = [#tpu.dimension_semantics<parallel>, #tpu.dimension_semantics<parallel>], iteration_bounds = array<i64: 2, 4>, scalar_prefetch = 0 : i64, scratch_operands = 0 : i64, tpu.core_type = #tpu.core_type<tc>, window_params = [{transform_indices = @transform_0, window_bounds = array<i64: 1, 64, 128>}, {transform_indices = @transform_1, window_bounds = array<i64: 1, 8, 128>}, {pipeline_mode = #tpu.pipeline_mode<synchronous>, transform_indices = @transform_2, window_bounds = array<i64: 1, 128>}, {pipeline_mode = #tpu.pipeline_mode<synchronous>, transform_indices = @transform_3, window_bounds = array<i64: 1, 128>}, {pipeline_mode = #tpu.pipeline_mode<synchronous>, transform_indices = @transform_4, window_bounds = array<i64: 128, 128>}, {pipeline_mode = #tpu.pipeline_mode<synchronous>, transform_indices = @transform_5, window_bounds = array<i64: 1, 128>}, {pipeline_mode = #tpu.pipeline_mode<synchronous>, transform_indices = @transform_6, window_bounds = array<i64: 128, 128>}, {pipeline_mode = #tpu.pipeline_mode<synchronous>, transform_indices = @transform_7, window_bounds = array<i64: 1, 128>}, {pipeline_mode = #tpu.pipeline_mode<synchronous>, transform_indices = @transform_8, window_bounds = array<i64: 3, 128>}, {pipeline_mode = #tpu.pipeline_mode<synchronous>, transform_indices = @transform_9, window_bounds = array<i64: 1, 128>}, {pipeline_mode = #tpu.pipeline_mode<synchronous>, transform_indices = @transform_10, window_bounds = array<i64: 1, 128>}, {pipeline_mode = #tpu.pipeline_mode<synchronous>, transform_indices = @transform_11, window_bounds = array<i64: 1, 128>}, {pipeline_mode = #tpu.pipeline_mode<synchronous>, transform_indices = @transform_12, window_bounds = array<i64: 128, 128>}, {pipeline_mode = #tpu.pipeline_mode<synchronous>, transform_indices = @transform_13, window_bounds = array<i64: 1, 128>}, {transform_indices = @transform_14, window_bounds = array<i64: 1, 64, 128>}]} {
    %c0 = arith.constant 0 : index
    %c0_0 = arith.constant 0 : index
    %c0_1 = arith.constant 0 : index
    %0 = vector.load %arg2[%c0, %c0_0, %c0_1] : memref<1x64x128xf32, #tpu.memory_space<vmem>>, vector<1x64x128xf32>
    %1 = vector.shape_cast %0 : vector<1x64x128xf32> to vector<64x128xf32>
    %c0_2 = arith.constant 0 : index
    %c0_3 = arith.constant 0 : index
    %c0_4 = arith.constant 0 : index
    %2 = vector.load %arg3[%c0_2, %c0_3, %c0_4] : memref<1x8x128xf32, #tpu.memory_space<vmem>>, vector<1x8x128xf32>
    %3 = vector.shape_cast %2 : vector<1x8x128xf32> to vector<8x128xf32>
    %4 = tpu.concatenate %1, %3 in 0 : vector<64x128xf32>, vector<8x128xf32> -> vector<72x128xf32>
    %c0_5 = arith.constant 0 : index
    %c0_6 = arith.constant 0 : index
    %5 = vector.load %arg4[%c0_5, %c0_6] : memref<1x128xf32, #tpu.memory_space<vmem>>, vector<1x128xf32>
    %c0_7 = arith.constant 0 : index
    %c0_8 = arith.constant 0 : index
    %6 = vector.load %arg5[%c0_7, %c0_8] : memref<1x128xf32, #tpu.memory_space<vmem>>, vector<1x128xf32>
    %cst = arith.constant dense<0.000000e+00> : vector<72xf32>
    %7 = vector.multi_reduction <add>, %4, %cst [1] : vector<72x128xf32> to vector<72xf32>
    %8 = vector.shape_cast %7 : vector<72xf32> to vector<72x1xf32>
    %cst_9 = arith.constant 0.020833334 : f32
    %9 = vector.broadcast %cst_9 : f32 to vector<72x1xf32>
    %10 = arith.mulf %8, %9 : vector<72x1xf32>
    %11 = vector.broadcast %10 : vector<72x1xf32> to vector<72x128xf32>
    %12 = arith.subf %4, %11 : vector<72x128xf32>
    %13 = arith.mulf %12, %12 : vector<72x128xf32>
    %cst_10 = arith.constant dense<0.000000e+00> : vector<72xf32>
    %14 = vector.multi_reduction <add>, %13, %cst_10 [1] : vector<72x128xf32> to vector<72xf32>
    %15 = vector.shape_cast %14 : vector<72xf32> to vector<72x1xf32>
    %cst_11 = arith.constant 8.000000e+01 : f32
    %16 = vector.broadcast %cst_11 : f32 to vector<72x1xf32>
    %17 = arith.mulf %16, %10 : vector<72x1xf32>
    %18 = arith.mulf %17, %10 : vector<72x1xf32>
    %19 = arith.subf %15, %18 : vector<72x1xf32>
    %cst_12 = arith.constant 0.020833334 : f32
    %20 = vector.broadcast %cst_12 : f32 to vector<72x1xf32>
    %21 = arith.mulf %19, %20 : vector<72x1xf32>
    %cst_13 = arith.constant 0.000000e+00 : f32
    %22 = vector.broadcast %cst_13 : f32 to vector<72x1xf32>
    %23 = arith.maximumf %21, %22 : vector<72x1xf32>
    %cst_14 = arith.constant 9.99999974E-6 : f32
    %24 = vector.broadcast %cst_14 : f32 to vector<72x1xf32>
    %25 = arith.addf %23, %24 : vector<72x1xf32>
    %26 = math.rsqrt %25 : vector<72x1xf32>
    %27 = vector.broadcast %26 : vector<72x1xf32> to vector<72x128xf32>
    %28 = arith.mulf %12, %27 : vector<72x128xf32>
    %29 = vector.broadcast %5 : vector<1x128xf32> to vector<72x128xf32>
    %30 = arith.mulf %28, %29 : vector<72x128xf32>
    %31 = vector.broadcast %6 : vector<1x128xf32> to vector<72x128xf32>
    %32 = arith.addf %30, %31 : vector<72x128xf32>
    %c0_15 = arith.constant 0 : index
    %c0_16 = arith.constant 0 : index
    %33 = vector.load %arg6[%c0_15, %c0_16] : memref<128x128xf32, #tpu.memory_space<vmem>>, vector<128x128xf32>
    %cst_17 = arith.constant dense<0.000000e+00> : vector<72x128xf32>
    %34 = tpu.matmul %32, %33, %cst_17 {dimension_numbers = #tpu.dot_dimension_numbers<[1], [0], [0], [1], [0, 0, 1, 1], [], []>} : vector<72x128xf32>, vector<128x128xf32>, vector<72x128xf32> -> vector<72x128xf32>
    %c0_18 = arith.constant 0 : index
    %c0_19 = arith.constant 0 : index
    %35 = vector.load %arg7[%c0_18, %c0_19] : memref<1x128xf32, #tpu.memory_space<vmem>>, vector<1x128xf32>
    %36 = vector.broadcast %35 : vector<1x128xf32> to vector<72x128xf32>
    %37 = arith.addf %34, %36 : vector<72x128xf32>
    %c0_20 = arith.constant 0 : index
    %c0_21 = arith.constant 0 : index
    %38 = vector.load %arg8[%c0_20, %c0_21] : memref<128x128xf32, #tpu.memory_space<vmem>>, vector<128x128xf32>
    %cst_22 = arith.constant dense<0.000000e+00> : vector<72x128xf32>
    %39 = tpu.matmul %32, %38, %cst_22 {dimension_numbers = #tpu.dot_dimension_numbers<[1], [0], [0], [1], [0, 0, 1, 1], [], []>} : vector<72x128xf32>, vector<128x128xf32>, vector<72x128xf32> -> vector<72x128xf32>
    %c0_23 = arith.constant 0 : index
    %c0_24 = arith.constant 0 : index
    %40 = vector.load %arg9[%c0_23, %c0_24] : memref<1x128xf32, #tpu.memory_space<vmem>>, vector<1x128xf32>
    %41 = vector.broadcast %40 : vector<1x128xf32> to vector<72x128xf32>
    %42 = arith.addf %39, %41 : vector<72x128xf32>
    %43 = arith.negf %42 : vector<72x128xf32>
    %44 = math.exp %43 : vector<72x128xf32>
    %cst_25 = arith.constant 1.000000e+00 : f32
    %45 = vector.broadcast %cst_25 : f32 to vector<72x128xf32>
    %46 = arith.addf %45, %44 : vector<72x128xf32>
    %47 = arith.divf %45, %46 : vector<72x128xf32>
    %48 = arith.mulf %37, %47 : vector<72x128xf32>
    %49 = tpu.iota {dimensions = array<i32: 0>} : vector<72x1xi32>
    %c64_i32 = arith.constant 64 : i32
    %50 = arith.muli %arg1, %c64_i32 : i32
    %51 = vector.broadcast %50 : i32 to vector<72x1xi32>
    %52 = arith.addi %51, %49 : vector<72x1xi32>
    %c1_i32 = arith.constant 1 : i32
    %53 = vector.broadcast %c1_i32 : i32 to vector<72x1xi32>
    %54 = arith.subi %52, %53 : vector<72x1xi32>
    %c0_i32 = arith.constant 0 : i32
    %55 = vector.broadcast %c0_i32 : i32 to vector<72x1xi32>
    %56 = arith.cmpi sge, %54, %55 : vector<72x1xi32>
    %c200_i32 = arith.constant 200 : i32
    %57 = vector.broadcast %c200_i32 : i32 to vector<72x1xi32>
    %58 = arith.cmpi slt, %54, %57 : vector<72x1xi32>
    %59 = arith.andi %56, %58 : vector<72x1xi1>
    %cst_26 = arith.constant 0.000000e+00 : f32
    %60 = vector.shape_cast %59 : vector<72x1xi1> to vector<72x1xi1>
    %61 = vector.broadcast %60 : vector<72x1xi1> to vector<72x128xi1>
    %62 = vector.broadcast %cst_26 : f32 to vector<72x128xf32>
    %63 = arith.select %61, %48, %62 : vector<72x128xi1>, vector<72x128xf32>
    %64 = vector.extract_strided_slice %63 {offsets = [0, 0], sizes = [64, 128], strides = [1, 1]} : vector<72x128xf32> to vector<64x128xf32>
    %c0_27 = arith.constant 0 : index
    %c0_28 = arith.constant 0 : index
    %65 = vector.load %arg10[%c0_27, %c0_28] : memref<3x128xf32, #tpu.memory_space<vmem>>, vector<1x128xf32>
    %66 = vector.broadcast %65 : vector<1x128xf32> to vector<64x128xf32>
    %67 = arith.mulf %64, %66 : vector<64x128xf32>
    %c71_i32 = arith.constant 71 : i32
    %68 = tpu.dynamic_rotate %63 by %c71_i32 dim 0 : vector<72x128xf32>, i32 -> vector<72x128xf32>
    %69 = vector.extract_strided_slice %68 {offsets = [0, 0], sizes = [64, 128], strides = [1, 1]} : vector<72x128xf32> to vector<64x128xf32>
    %c1 = arith.constant 1 : index
    %c0_29 = arith.constant 0 : index
    %70 = vector.load %arg10[%c1, %c0_29] : memref<3x128xf32, #tpu.memory_space<vmem>>, vector<1x128xf32>
    %71 = vector.broadcast %70 : vector<1x128xf32> to vector<64x128xf32>
    %72 = arith.mulf %69, %71 : vector<64x128xf32>
    %73 = arith.addf %67, %72 : vector<64x128xf32>
    %c70_i32 = arith.constant 70 : i32
    %74 = tpu.dynamic_rotate %63 by %c70_i32 dim 0 : vector<72x128xf32>, i32 -> vector<72x128xf32>
    %75 = vector.extract_strided_slice %74 {offsets = [0, 0], sizes = [64, 128], strides = [1, 1]} : vector<72x128xf32> to vector<64x128xf32>
    %c2 = arith.constant 2 : index
    %c0_30 = arith.constant 0 : index
    %76 = vector.load %arg10[%c2, %c0_30] : memref<3x128xf32, #tpu.memory_space<vmem>>, vector<1x128xf32>
    %77 = vector.broadcast %76 : vector<1x128xf32> to vector<64x128xf32>
    %78 = arith.mulf %75, %77 : vector<64x128xf32>
    %79 = arith.addf %73, %78 : vector<64x128xf32>
    %c0_31 = arith.constant 0 : index
    %c0_32 = arith.constant 0 : index
    %80 = vector.load %arg11[%c0_31, %c0_32] : memref<1x128xf32, #tpu.memory_space<vmem>>, vector<1x128xf32>
    %81 = vector.broadcast %80 : vector<1x128xf32> to vector<64x128xf32>
    %82 = arith.addf %79, %81 : vector<64x128xf32>
    %c0_33 = arith.constant 0 : index
    %c0_34 = arith.constant 0 : index
    %83 = vector.load %arg12[%c0_33, %c0_34] : memref<1x128xf32, #tpu.memory_space<vmem>>, vector<1x128xf32>
    %c0_35 = arith.constant 0 : index
    %c0_36 = arith.constant 0 : index
    %84 = vector.load %arg13[%c0_35, %c0_36] : memref<1x128xf32, #tpu.memory_space<vmem>>, vector<1x128xf32>
    %cst_37 = arith.constant dense<0.000000e+00> : vector<64xf32>
    %85 = vector.multi_reduction <add>, %82, %cst_37 [1] : vector<64x128xf32> to vector<64xf32>
    %86 = vector.shape_cast %85 : vector<64xf32> to vector<64x1xf32>
    %cst_38 = arith.constant 1.562500e-02 : f32
    %87 = vector.broadcast %cst_38 : f32 to vector<64x1xf32>
    %88 = arith.mulf %86, %87 : vector<64x1xf32>
    %89 = vector.broadcast %88 : vector<64x1xf32> to vector<64x128xf32>
    %90 = arith.subf %82, %89 : vector<64x128xf32>
    %91 = arith.mulf %90, %90 : vector<64x128xf32>
    %cst_39 = arith.constant dense<0.000000e+00> : vector<64xf32>
    %92 = vector.multi_reduction <add>, %91, %cst_39 [1] : vector<64x128xf32> to vector<64xf32>
    %93 = vector.shape_cast %92 : vector<64xf32> to vector<64x1xf32>
    %cst_40 = arith.constant 6.400000e+01 : f32
    %94 = vector.broadcast %cst_40 : f32 to vector<64x1xf32>
    %95 = arith.mulf %94, %88 : vector<64x1xf32>
    %96 = arith.mulf %95, %88 : vector<64x1xf32>
    %97 = arith.subf %93, %96 : vector<64x1xf32>
    %cst_41 = arith.constant 1.562500e-02 : f32
    %98 = vector.broadcast %cst_41 : f32 to vector<64x1xf32>
    %99 = arith.mulf %97, %98 : vector<64x1xf32>
    %cst_42 = arith.constant 0.000000e+00 : f32
    %100 = vector.broadcast %cst_42 : f32 to vector<64x1xf32>
    %101 = arith.maximumf %99, %100 : vector<64x1xf32>
    %cst_43 = arith.constant 9.99999974E-6 : f32
    %102 = vector.broadcast %cst_43 : f32 to vector<64x1xf32>
    %103 = arith.addf %101, %102 : vector<64x1xf32>
    %104 = math.rsqrt %103 : vector<64x1xf32>
    %105 = vector.broadcast %104 : vector<64x1xf32> to vector<64x128xf32>
    %106 = arith.mulf %90, %105 : vector<64x128xf32>
    %107 = vector.broadcast %83 : vector<1x128xf32> to vector<64x128xf32>
    %108 = arith.mulf %106, %107 : vector<64x128xf32>
    %109 = vector.broadcast %84 : vector<1x128xf32> to vector<64x128xf32>
    %110 = arith.addf %108, %109 : vector<64x128xf32>
    %111 = arith.negf %110 : vector<64x128xf32>
    %112 = math.exp %111 : vector<64x128xf32>
    %cst_44 = arith.constant 1.000000e+00 : f32
    %113 = vector.broadcast %cst_44 : f32 to vector<64x128xf32>
    %114 = arith.addf %113, %112 : vector<64x128xf32>
    %115 = arith.divf %113, %114 : vector<64x128xf32>
    %116 = arith.mulf %110, %115 : vector<64x128xf32>
    %c0_45 = arith.constant 0 : index
    %c0_46 = arith.constant 0 : index
    %117 = vector.load %arg14[%c0_45, %c0_46] : memref<128x128xf32, #tpu.memory_space<vmem>>, vector<128x128xf32>
    %cst_47 = arith.constant dense<0.000000e+00> : vector<64x128xf32>
    %118 = tpu.matmul %116, %117, %cst_47 {dimension_numbers = #tpu.dot_dimension_numbers<[1], [0], [0], [1], [0, 0, 1, 1], [], []>} : vector<64x128xf32>, vector<128x128xf32>, vector<64x128xf32> -> vector<64x128xf32>
    %c0_48 = arith.constant 0 : index
    %c0_49 = arith.constant 0 : index
    %119 = vector.load %arg15[%c0_48, %c0_49] : memref<1x128xf32, #tpu.memory_space<vmem>>, vector<1x128xf32>
    %120 = vector.broadcast %119 : vector<1x128xf32> to vector<64x128xf32>
    %121 = arith.addf %118, %120 : vector<64x128xf32>
    %c0_50 = arith.constant 0 : index
    %c0_51 = arith.constant 0 : index
    %c0_52 = arith.constant 0 : index
    %122 = vector.load %arg16[%c0_50, %c0_51, %c0_52] : memref<1x64x128xf32, #tpu.memory_space<vmem>>, vector<1x64x128xf32>
    %123 = vector.shape_cast %122 : vector<1x64x128xf32> to vector<64x128xf32>
    %124 = vector.shape_cast %121 : vector<64x128xf32> to vector<1x64x128xf32>
    tpu.vector_store %arg16[%c0_50, %c0_51, %c0_52], %124 {strides = array<i32>} : memref<1x64x128xf32, #tpu.memory_space<vmem>>, vector<1x64x128xf32>,
    return
  }
  func.func @transform_0(%arg0: i32, %arg1: i32) -> (i32, i32, i32) {
    %c0_i32 = arith.constant 0 : i32
    %c0_i32_0 = arith.constant 0 : i32
    return %arg0, %arg1, %c0_i32 : i32, i32, i32
  }
  func.func @transform_1(%arg0: i32, %arg1: i32) -> (i32, i32, i32) {
    %c1_i32 = arith.constant 1 : i32
    %0 = arith.addi %arg1, %c1_i32 : i32
    %c8_i32 = arith.constant 8 : i32
    %1 = arith.muli %0, %c8_i32 : i32
    %c0_i32 = arith.constant 0 : i32
    %c0_i32_0 = arith.constant 0 : i32
    return %arg0, %1, %c0_i32 : i32, i32, i32
  }
  func.func @transform_2(%arg0: i32, %arg1: i32) -> (i32, i32) {
    %c0_i32 = arith.constant 0 : i32
    %c0_i32_0 = arith.constant 0 : i32
    %c0_i32_1 = arith.constant 0 : i32
    return %c0_i32, %c0_i32_0 : i32, i32
  }
  func.func @transform_3(%arg0: i32, %arg1: i32) -> (i32, i32) {
    %c0_i32 = arith.constant 0 : i32
    %c0_i32_0 = arith.constant 0 : i32
    %c0_i32_1 = arith.constant 0 : i32
    return %c0_i32, %c0_i32_0 : i32, i32
  }
  func.func @transform_4(%arg0: i32, %arg1: i32) -> (i32, i32) {
    %c0_i32 = arith.constant 0 : i32
    %c0_i32_0 = arith.constant 0 : i32
    %c0_i32_1 = arith.constant 0 : i32
    return %c0_i32, %c0_i32_0 : i32, i32
  }
  func.func @transform_5(%arg0: i32, %arg1: i32) -> (i32, i32) {
    %c0_i32 = arith.constant 0 : i32
    %c0_i32_0 = arith.constant 0 : i32
    %c0_i32_1 = arith.constant 0 : i32
    return %c0_i32, %c0_i32_0 : i32, i32
  }
  func.func @transform_6(%arg0: i32, %arg1: i32) -> (i32, i32) {
    %c0_i32 = arith.constant 0 : i32
    %c0_i32_0 = arith.constant 0 : i32
    %c0_i32_1 = arith.constant 0 : i32
    return %c0_i32, %c0_i32_0 : i32, i32
  }
  func.func @transform_7(%arg0: i32, %arg1: i32) -> (i32, i32) {
    %c0_i32 = arith.constant 0 : i32
    %c0_i32_0 = arith.constant 0 : i32
    %c0_i32_1 = arith.constant 0 : i32
    return %c0_i32, %c0_i32_0 : i32, i32
  }
  func.func @transform_8(%arg0: i32, %arg1: i32) -> (i32, i32) {
    %c0_i32 = arith.constant 0 : i32
    %c0_i32_0 = arith.constant 0 : i32
    %c0_i32_1 = arith.constant 0 : i32
    return %c0_i32, %c0_i32_0 : i32, i32
  }
  func.func @transform_9(%arg0: i32, %arg1: i32) -> (i32, i32) {
    %c0_i32 = arith.constant 0 : i32
    %c0_i32_0 = arith.constant 0 : i32
    %c0_i32_1 = arith.constant 0 : i32
    return %c0_i32, %c0_i32_0 : i32, i32
  }
  func.func @transform_10(%arg0: i32, %arg1: i32) -> (i32, i32) {
    %c0_i32 = arith.constant 0 : i32
    %c0_i32_0 = arith.constant 0 : i32
    %c0_i32_1 = arith.constant 0 : i32
    return %c0_i32, %c0_i32_0 : i32, i32
  }
  func.func @transform_11(%arg0: i32, %arg1: i32) -> (i32, i32) {
    %c0_i32 = arith.constant 0 : i32
    %c0_i32_0 = arith.constant 0 : i32
    %c0_i32_1 = arith.constant 0 : i32
    return %c0_i32, %c0_i32_0 : i32, i32
  }
  func.func @transform_12(%arg0: i32, %arg1: i32) -> (i32, i32) {
    %c0_i32 = arith.constant 0 : i32
    %c0_i32_0 = arith.constant 0 : i32
    %c0_i32_1 = arith.constant 0 : i32
    return %c0_i32, %c0_i32_0 : i32, i32
  }
  func.func @transform_13(%arg0: i32, %arg1: i32) -> (i32, i32) {
    %c0_i32 = arith.constant 0 : i32
    %c0_i32_0 = arith.constant 0 : i32
    %c0_i32_1 = arith.constant 0 : i32
    return %c0_i32, %c0_i32_0 : i32, i32
  }
  func.func @transform_14(%arg0: i32, %arg1: i32) -> (i32, i32, i32) {
    %c0_i32 = arith.constant 0 : i32
    %c0_i32_0 = arith.constant 0 : i32
    return %arg0, %arg1, %c0_i32 : i32, i32, i32
  }
}

</mosaic_0001>

<bundles_post_ra>
// kernel: tpu_custom_call.1
= control target key start
LH: loop header
LB: loop body
LE: loop exit
PB: predicated region body
PF: predicated region fallthrough
CT: control target
= control target key end

     0   :  { %s4038_s0 = inlined_call_operand.hbm [shape: f32[2,264,128], index: 0, kind: input, shape index: {}]   ;;  %s4039_s1 = inlined_call_operand.hbm [shape: f32[2,264,128], index: 1, kind: input, shape index: {}]   ;;  %s4040_s2 = inlined_call_operand.vmem [shape: f32[1,128], index: 2, kind: input, shape index: {}]   ;;  %s4041_s3 = inlined_call_operand.vmem [shape: f32[1,128], index: 3, kind: input, shape index: {}]   ;;  %s4042_s4 = inlined_call_operand.hbm [shape: f32[128,128], index: 4, kind: input, shape index: {}]   ;;  %s4043_s5 = inlined_call_operand.vmem [shape: f32[1,128], index: 5, kind: input, shape index: {}]   ;;  %s4044_s6 = inlined_call_operand.hbm [shape: f32[128,128], index: 6, kind: input, shape index: {}]   ;;  %s4045_s7 = inlined_call_operand.hbm [shape: f32[1,128], index: 7, kind: input, shape index: {}]   ;;  %s4046_s8 = inlined_call_operand.vmem [shape: f32[3,128], index: 8, kind: input, shape index: {}]   ;;  %s4047_s9 = inlined_call_operand.vmem [shape: f32[1,128], index: 9, kind: input, shape index: {}]   ;;  %s4048_s10 = inlined_call_operand.vmem [shape: f32[1,128], index: 10, kind: input, shape index: {}]   ;;  %s4049_s11 = inlined_call_operand.vmem [shape: f32[1,128], index: 11, kind: input, shape index: {}]   ;;  %s4050_s12 = inlined_call_operand.hbm [shape: f32[128,128], index: 12, kind: input, shape index: {}]   ;;  %s4051_s13 = inlined_call_operand.vmem [shape: f32[1,128], index: 13, kind: input, shape index: {}]   ;;  %s4052_s14 = inlined_call_operand.hbm [shape: f32[2,256,128], index: 14, kind: output, shape index: {}]  }
   0x1   :  { %4070 = sst [smem:[#allocation33_spill]] %s4040_s2 }
   0x2   :  { %4071 = sst [smem:[#allocation34_spill]] %s4041_s3 }
   0x3   :  { %4072 = sst [smem:[#allocation35_spill]] %s4043_s5 }
   0x4   :  { %4073 = sst [smem:[#allocation36_spill]] %s4044_s6 }
   0x5   :  { %4074 = sst [smem:[#allocation37_spill]] %s4046_s8 }
   0x6   :  { %4075 = sst [smem:[#allocation38_spill]] %s4047_s9 }
   0x7   :  { %4076 = sst [smem:[#allocation39_spill]] %s4048_s10 }
   0x8   :  { %4077 = sst [smem:[#allocation40_spill]] %s4049_s11 }
   0x9   :  { %4078 = sst [smem:[#allocation41_spill]] %s4051_s13 }
   0xa   :  { %4079 = sst [smem:[#allocation42_spill]] %s4052_s14 }
   0xb   :  { %19 = vsyncpa [#allocation3], 0 }
   0xc   :  { %21 = vsyncpa [#allocation3 + $0x1], 0 }
   0xd   :  { %22 = vsyncpa [#allocation6], 0 }
   0xe   :  { %24 = vsyncpa [#allocation6 + $0x1], 0 }
   0xf   :  { %25 = vsyncpa [#allocation9], 0 }
  0x10   :  { %26 = vsyncpa [#allocation12], 0 }
  0x11   :  { %27 = vsyncpa [#allocation4], 0 }
  0x12   :  { %29 = vsyncpa [#allocation4 + $0x1], 0  ;;  %s2760_s29 = smov 0   ;;  %s2762_s30 = smov 0  }
  0x13   :  { %s2764_s15 = smov 0   ;;  %s2766_s16 = smov 0  }
  0x14   :  { %s2768_s17 = smov 0   ;;  %s2770_s18 = smov 0  }
  0x15   :  { %s2772_s19 = smov 0   ;;  %s2774_s20 = smov 0  }
  0x16   :  { %s2776_s21 = smov 0   ;;  %s2778_s22 = smov 0  }
  0x17   :  { %s2780_s23 = smov 0  }
  0x18 LB: > { %4080 = sst [smem:[#allocation20_spill]] %s2636_s30  ;;  %s2816_s24 = sadd.s32 4294967295, %s2672_s23   ;;  %s2672_s23 = sphi %s2780_s23, %s35_s23   ;;  %s2668_s22 = sphi %s2778_s22, %s4173_s22   ;;  %s2664_s21 = sphi %s2776_s21, %s4165_s21   ;;  %s2660_s20 = sphi %s2774_s20, %s4172_s20   ;;  %s2656_s19 = sphi %s2772_s19, %s4164_s19   ;;  %s2652_s18 = sphi %s2770_s18, %s4171_s18   ;;  %s2648_s17 = sphi %s2768_s17, %s4170_s17   ;;  %s2644_s16 = sphi %s2766_s16, %s4169_s16   ;;  %s2640_s15 = sphi %s2764_s15, %s4168_s15   ;;  %s2636_s30 = sphi %s2762_s30, %s4167_s30   ;;  %s2632_s29 = sphi %s2760_s29, %s4161_s29  }
  0x19   : > { %4081 = sst [smem:[#allocation21_spill]] %s2644_s16  ;;  %s44_s26 = sadd.s32 1, %s2664_s21 }
  0x1a   : > { %4082 = sst [smem:[#allocation22_spill]] %s2656_s19  ;;  %s47_s27 = sadd.s32 1, %s2668_s22 }
  0x1b   : > { %4083 = sst [smem:[#allocation23_spill]] %s2660_s20  ;;  %p45_p0 = scmp.ge.s32.totalorder %s44_s26, 4 }
  0x1c   : > { %4084 = sst [smem:[#allocation24_spill]] %s2664_s21  ;;  %s56_s28 = sadd.s32 1, %s2652_s18 }
  0x1d   : > { %4085 = sst [smem:[#allocation25_spill]] %s2816_s24  ;;  %p63_p1 = scmp.ne.s32.totalorder %s2652_s18, %s2648_s17 }
  0x1e   : > { %p64_p2 = scmp.eq.s32.totalorder %s2672_s23, 0  ;;  %s4175_s26 = smov (%p45_p0, %s44_s26), 0 }
  0x1f   : > { %4086 = sst [smem:[#allocation26_spill]] %s4175_s26  ;;  %s4177_s27 = smov (!%p45_p0, %s47_s27), %s2668_s22 }
  0x20   : > { %s52_s14 = ssub.s32 %s2664_s21, %s4175_s26  ;;  %p2835_p3 = por %p64_p2, %p63_p1 }
  0x21   : > { %p49_p4 = scmp.ge.s32.totalorder %s4177_s27, 2  ;;  %p4058_p5 = scmp.ne.s32.totalorder %s2648_s17, %s2644_s16 }
  0x22   : > { %s4087_s25 = scalar_select %p2835_p3, 1, 0 }
  0x23   : > { %p70_p6 = scmp.eq.s32.totalorder %s2816_s24, 0  ;;  %s2843_s20 = sshll.u32 %s2664_s21, 3 }
  0x24   : > { %s4179_s27 = smov (%p49_p4, %s4177_s27), 0  ;;  %s2051_s11 = sadd.s32 8, %s2843_s20 }
  0x25   : > { %4088 = sst [smem:[#allocation27_spill]] %s4179_s27  ;;  %p2852_p7 = por %p70_p6, %p4058_p5 }
  0x26   : > { %s51_s10 = ssub.s32 %s2668_s22, %s4179_s27  ;;  %s2052_s21 = sshll.u32 %s4175_s26, 3 }
  0x27   : > { %s4089_s13 = scalar_select %p2852_p7, 1, 0 }
  0x28   : > { %s53_s9 = sor.u32 %s52_s14, %s51_s10  ;;  %s2053_s8 = sadd.s32 8, %s2052_s21 }
  0x29   : > { %p54_p8 = scmp.eq.s32.totalorder %s53_s9, 0  ;;  %s84_s5 = ssub.s32 %s2051_s11, %s2053_s8 }
  0x2a   : > { %s85_s19 = sor.u32 %s84_s5, %s51_s10  ;;  %s88_s3 = sadd.s32 1, %s2640_s15 }
  0x2b   : > { %s2862_s2 = scalar_select %p54_p8, %s2652_s18, %s56_s28  }
  0x2c   : > { %p86_p9 = scmp.eq.s32.totalorder %s85_s19, 0  ;;  %p95_p10 = scmp.ne.s32.totalorder %s2640_s15, %s2636_s30 }
  0x2d   : > { %4090 = sst [smem:[#allocation28_spill]] %s2862_s2  ;;  %p101_p11 = scmp.ne.s32.totalorder %s2636_s30, %s2632_s29 }
  0x2e   : > { %p379_p12 = scmp.eq.s32.totalorder %s2816_s24, 7  ;;  %p2874_p13 = por %p95_p10, %p64_p2 }
  0x2f   : > { %s2870_s27 = scalar_select %p86_p9, %s2640_s15, %s88_s3  }
  0x30   : > { %p2880_p0 = por %p101_p11, %p70_p6  ;;  %p2887_p4 = por %p379_p12, %p63_p1 }
  0x31   : > { %4091 = sst [smem:[#allocation29_spill]] %s2870_s27  ;;  %s4097_s8 = sadd.s32 4294967294, %s2672_s23  }
  0x32   : > { %s4093_s9 = scalar_select %p2880_p0, 1, 0 }
  0x33   : > { %s4095_s5 = scalar_select %p2887_p4, 1, 0 }
  0x34   : > { %4094 = sst [smem:[#allocation30_spill]] %s4093_s9  ;;  %p385_p8 = scmp.eq.s32.totalorder %s4097_s8, 7 }
  0x35   : > { %4096 = sst [smem:[#allocation31_spill]] %s4095_s5  ;;  %p1993_p5 = scmp.ge.s32.totalorder %s2672_s23, 1 }
  0x36   : > { %p392_p9 = scmp.lt.s32.totalorder %s2672_s23, 9  ;;  %p4098_p7 = scmp.ne.s32.totalorder %s2648_s17, %s2644_s16 }
  0x37   : > { %s4102_s6 = sld [smem:[#allocation36_spill]]  ;;  %s2674_s28 = smov [#allocation8]  }
  0x38   : > { %p2898_p3 = por %p385_p8, %p4098_p7  ;;  %p2902_p2 = pnand %p1993_p5, %p392_p9 }
  0x39   : > { %s428_s8 = sshll.u32 %s2674_s28, 4  ;;  %s2675_s26 = smov 128   ;;  %s429_s8 = int_to_ptr.vmem [resolvable:$true] %s428_s8 }
  0x3a   : > { %s4099_s3 = scalar_select %p2898_p3, 1, 0 }
  0x3b   : > { %p2108_p1 = pneg %p2902_p2  ;;  %s2676_s2 = smov 8  }
  0x3c   : > { %4100 = sst [smem:[#allocation32_spill]] %s4099_s3  ;;  %s2677_s27 = smov [#allocation7]  }
  0x3d   : > { %s426_s19 = sshll.u32 %s4102_s6, 4  ;;  %p2913_p10 = pnand %p2108_p1, %p70_p6  ;;  %s427_s19 = int_to_ptr.hbm [resolvable:$true] %s426_s19 }
  0x3e   : > { %s409_s6 = sshll.u32 %s4042_s4, 4  ;;  %s411_s3 = sshll.u32 %s2677_s27, 4  ;;  %s410_s6 = int_to_ptr.hbm [resolvable:$true] %s409_s6  ;;  %s412_s3 = int_to_ptr.vmem [resolvable:$true] %s411_s3 }
  0x3f   : > { %2114 = dma.hbm_to_vmem [thread:$0]  (!%p2913_p10), %s427_s19, 2048, %s429_s8, [#allocation9], %s2675_s26, %s2675_s26, %s2676_s2  }
  0x40   : > { %s441_s9 = sshll.u32 %s4045_s7, 4  ;;  %s464_s19 = sshll.u32 %s4050_s12, 4  ;;  %s442_s9 = int_to_ptr.hbm [resolvable:$true] %s441_s9  ;;  %s465_s19 = int_to_ptr.hbm [resolvable:$true] %s464_s19 }
  0x41   : > { %2111 = dma.hbm_to_vmem [thread:$0]  (!%p2913_p10), %s410_s6, 2048, %s412_s3, [#allocation6], %s2675_s26, %s2675_s26, %s2676_s2  }
  0x42   : > { %s2678_s8 = smov [#allocation10]   ;;  %s2679_s11 = smov [#allocation11]  }
  0x43   : > { %s443_s24 = sshll.u32 %s2678_s8, 4  ;;  %s466_s27 = sshll.u32 %s2679_s11, 4  ;;  %s444_s24 = int_to_ptr.vmem [resolvable:$true] %s443_s24  ;;  %s467_s27 = int_to_ptr.vmem [resolvable:$true] %s466_s27 }
  0x44   : > { %2117 = dma.hbm_to_vmem [thread:$0]  (!%p2913_p10), %s442_s9, 16, %s444_s24, [#allocation9]  }
  0x45   : > { %2120 = dma.hbm_to_vmem [thread:$0]  (!%p2913_p10), %s465_s19, 2048, %s467_s27, [#allocation12], %s2675_s26, %s2675_s26, %s2676_s2  }
  0x46   : > { %p1998_p5 = scmp.ge.s32.totalorder %s2672_s23, 8 }
  0x47   : > { %p4104_p7 = scmp.ne.s32.totalorder (!%p1998_p5), %s4087_s25, 0 }
  0x48   : > { %479 = sbr.rel (%p1998_p5) target bundleno = 109 (0x6d), region = 64 }
  0x4d   : > { %482 = sbr.rel (!%p4104_p7) target bundleno = 101 (0x65), region = 68  ;;  %s483_s6 = sand.u32 (%p4104_p7), 1, %s2652_s18  }
  0x4e   : > { %s1999_s30 = sshll.u32 (%p4104_p7), %s483_s6, 6  ;;  %s2938_s16 = scalar_lea.sflag (%p4104_p7), [#allocation3], %s483_s6 }
  0x4f   : > { %s487_s5 = scalar_lea.vmem (%p4104_p7), [#allocation2], %s1999_s30  ;;  %s2086_s24 = smul.u32 (%p4104_p7), 33, %s2668_s22 }
  0x50   : > { %s2941_s9 = sshll.u32 (%p4104_p7), %s487_s5, 4  ;;  %s2476_s27 = scalar_lea.hbm (%p4104_p7), %s4038_s0, 528  ;;  %s505_s9 = int_to_ptr.vmem [resolvable:$true] %s2941_s9 }
  0x51   : > { %s498_s3 = sadd.s32 (%p4104_p7), %s2086_s24, %s2843_s20 }
  0x52   : > { %s2003_s2 = sshll.u32 %s498_s3, 3 }
  0x53   : > { %s500_s25 = scalar_lea.hbm %s4038_s0, %s2003_s2 }
  0x54   : > { %s502_s29 = sshll.u32 %s500_s25, 4  ;;  %s503_s29 = int_to_ptr.hbm [resolvable:$true] %s502_s29 }
  0x55   : > { %s2465_s28 = sshra.s32 %s503_s29, 4  ;;  %s2466_s28 = int_to_ptr.hbm [resolvable:$true] %s2465_s28 }
  0x56   : > { %s2472_s19 = scalar_lea.hbm %s2466_s28, 64 }
  0x57   : > { %p2473_p11 = scmp.ne.s32.totalorder %s2466_s28, %s2472_s19  ;;  %p2478_p12 = scmp.lt.s32.totalorder %s2476_s27, %s2472_s19 }
  0x59   : > { %p2480_p8 = pnand %p2478_p12, %p2473_p11 }
  0x5b   : > { %2483 = shalt.err (!%p2480_p8)
}
  0x5c   : > { %s2484_s6 = sshra.s32 %s505_s9, 4  ;;  %s2680_s5 = smov [#allocation2]   ;;  %s2485_s6 = int_to_ptr.vmem [resolvable:$true] %s2484_s6 }
  0x5d   : > { %s2491_s30 = scalar_lea.vmem %s2485_s6, 64  ;;  %s2495_s24 = scalar_lea.vmem %s2680_s5, 128 }
  0x5e   : > { %p2492_p9 = scmp.ne.s32.totalorder %s2485_s6, %s2491_s30  ;;  %p2497_p1 = scmp.lt.s32.totalorder %s2495_s24, %s2491_s30 }
  0x60   : > { %p2499_p10 = pnand %p2497_p1, %p2492_p9 }
  0x62   : > { %2502 = shalt.err (!%p2499_p10)
}
  0x63   : > { %s2681_s3 = smov 128   ;;  %s2682_s2 = smov 8  }
  0x64   : > { %510 = dma.hbm_to_vmem [thread:$0]  %s503_s29, 1024, %s505_s9, %s2938_s16, %s2681_s3, %s2681_s3, %s2682_s2  }
  0x65 PF: > { %s516_s26 = sand.u32 1, %s2640_s15   ;;  %s1878_s25 = smul.u32 33, %s2668_s22 }
  0x66   : > { %s2006_s21 = sshll.u32 %s516_s26, 3  ;;  %s514_s28 = sand.u32 1, %s2672_s23  }
  0x67   : > { %s1879_s19 = sadd.s32 %s2843_s20, %s1878_s25  ;;  %s518_s8 = scalar_lea.vmem [#allocation5], %s2006_s21 }
  0x68   : > { %s530_s11 = sshll.u32 %s518_s8, 4  ;;  %s2008_s27 = sshll.u32 %s1879_s19, 3  ;;  %s531_s11 = int_to_ptr.vmem [resolvable:$true] %s530_s11 }
  0x69   : > { %s1881_s5 = scalar_lea.hbm %s4039_s1, %s2008_s27  ;;  %s515_s9 = scalar_lea.sflag [#allocation6], %s514_s28 }
  0x6a   : > { %s1882_s24 = scalar_lea.hbm %s1881_s5, 64 }
  0x6b   : > { %s528_s16 = sshll.u32 %s1882_s24, 4  ;;  %s529_s16 = int_to_ptr.hbm [resolvable:$true] %s528_s16 }
  0x6c   : > { %2095 = dma.hbm_to_vmem [thread:$0]  (%p2874_p13), %s529_s16, 128, %s531_s11, %s515_s9  }
  0x6d PF: > { %539 = sbr.rel (%p2902_p2) target bundleno = 1152 (0x480), region = 76  ;;  %s2964_s20 = sand.u32 (!%p2902_p2), 1, %s2648_s17  }
  0x6e   : > { %s2010_s29 = sshll.u32 (!%p2902_p2), %s2964_s20, 6  ;;  %s542_s3 = scalar_lea.sflag (!%p2902_p2), [#allocation3], %s2964_s20 }
  0x6f   : > { %s2970_s2 = scalar_lea.vmem (!%p2902_p2), [#allocation2], %s2010_s29  ;;  %p4105_p5 = scmp.ne.s32.totalorder (!%p2902_p2), %s4089_s13, 0 }
  0x72   : > { %2605 = dma.done.wait (%p4105_p5), %s542_s3, 1024  }
  0x73   : > { %2607 = vsyncadd (%p4105_p5), %s542_s3, 4294966272  ;;  %s4106_s14 = sld [smem:[#allocation25_spill]] }
  0x74   : > { %s4107_s10 = sld [smem:[#allocation20_spill]] }
  0x79   : > { %s551_s21 = sand.u32 1, %s4106_s14  }
  0x7a   : > { %s553_s25 = sand.u32 1, %s4107_s10   ;;  %s552_s19 = scalar_lea.sflag [#allocation6], %s551_s21 }
  0x7b   : > { %s2011_s28 = sshll.u32 %s553_s25, 3 }
  0x7c   : > { %s555_s8 = scalar_lea.vmem [#allocation5], %s2011_s28 }
  0x7d   : > { %2609 = dma.done.wait (%p2880_p0), %s552_s19, 128  }
  0x7e   : > { %2611 = vsyncadd (%p2880_p0), %s552_s19, 4294967168 }
  0x7f   : > { %2613 = dma.done.wait (%p70_p6), [#allocation6], 2048  }
  0x80   : > { %2615 = vsyncadd (%p70_p6), [#allocation6], 4294965248 }
  0x81   : > { %2617 = dma.done.wait (%p70_p6), [#allocation9], 2064  }
  0x82   : > { %2619 = vsyncadd (%p70_p6), [#allocation9], 4294965232 }
  0x83   : > { %2621 = dma.done.wait (%p70_p6), [#allocation12], 2048  }
  0x84   : > { %2623 = vsyncadd (%p70_p6), [#allocation12], 4294965248  ;;  %v636_v0 = vld [vmem:[%s2970_s2 + $0x10] sm:$0xff]  ;;  %v634_v1 = vld [vmem:[%s2970_s2] sm:$0xff]  ;;  %s4109_s27 = sld [smem:[#allocation33_spill]]  ;;  %s3974_s10 = scalar_lea.vmem [#allocation13], %s2010_s29 }
  0x85   : > { %v638_v2 = vld [vmem:[%s2970_s2 + $0x20] sm:$0xff]  ;;  %649 = vadd.xlane.f32.xlu1 %v636_v0  ;;  %645 = vadd.xlane.f32.xlu0 %v634_v1  ;;  %v637_v3 = vld [vmem:[%s2970_s2 + $0x18] sm:$0xff]  ;;  %v635_v4 = vld [vmem:[%s2970_s2 + $0x8] sm:$0xff]  ;;  %s4110_s5 = sld [smem:[#allocation34_spill]] }
  0x86   : > { %653 = vadd.xlane.f32.xlu2 %v638_v2  ;;  %v641_v5 = vld [vmem:[%s2970_s2 + $0x38] sm:$0xff]  ;;  %v639_v6 = vld [vmem:[%s2970_s2 + $0x28] sm:$0xff]  ;;  %v640_v8 = vld [vmem:[%s2970_s2 + $0x30] sm:$0xff]  ;;  %s4113_s24 = sld [smem:[#allocation22_spill]] }
  0x87   : > { %v642_v7 = vld [vmem:[%s555_s8] sm:$0xff]  ;;  %v898_v49 = vld [vmem:[#allocation7 + $0x68] sm:$0xff]  ;;  %v897_v51 = vld [vmem:[#allocation7 + $0x60] sm:$0xff]  ;;  %s4114_s2 = sld [smem:[#allocation35_spill]] }
  0x88   : > { %v900_v45 = vld [vmem:[#allocation7 + $0x78] sm:$0xff]  ;;  %v899_v47 = vld [vmem:[#allocation7 + $0x70] sm:$0xff]  ;;  %v3071_v50 = vld [vmem:[#allocation8 + $0x68] sm:$0xff]  ;;  %s4121_s26 = sld [smem:[#allocation37_spill]] }
  0x89   : > { %v3065_v46 = vld [vmem:[#allocation8 + $0x78] sm:$0xff]  ;;  %905 = vmatpush.msra.mxu0 %v900_v45  ;;  %2054 = vmatpush.msra.mxu3 %v900_v45  ;;  %v3068_v48 = vld [vmem:[#allocation8 + $0x70] sm:$0xff]  ;;  %v3074_v52 = vld [vmem:[#allocation8 + $0x60] sm:$0xff]  ;;  %s4126_s11 = sld [smem:[#allocation38_spill]] }
  0x8a   : > { %969 = vmatpush.msra.mxu1 %v3065_v46  ;;  %v896_v53 = vld [vmem:[#allocation7 + $0x58] sm:$0xff]  ;;  %v895_v55 = vld [vmem:[#allocation7 + $0x50] sm:$0xff]  ;;  %v894_v57 = vld [vmem:[#allocation7 + $0x48] sm:$0xff]  ;;  %s4149_s30 = sld [smem:[#allocation39_spill]] }
  0x8b   : > { %906 = vmatpush.msra.mxu0 %v899_v47  ;;  %2055 = vmatpush.msra.mxu3 %v899_v47  ;;  %v3077_v54 = vld [vmem:[#allocation8 + $0x58] sm:$0xff]  ;;  %v3080_v56 = vld [vmem:[#allocation8 + $0x50] sm:$0xff]  ;;  %v3083_v58 = vld [vmem:[#allocation8 + $0x48] sm:$0xff]  ;;  %s4150_s9 = sld [smem:[#allocation40_spill]] }
  0x8c   : > { %970 = vmatpush.msra.mxu1 %v3068_v48  ;;  %v893_v59 = vld [vmem:[#allocation7 + $0x40] sm:$0xff]  ;;  %v892_v61 = vld [vmem:[#allocation7 + $0x38] sm:$0xff]  ;;  %v891_v63 = vld [vmem:[#allocation7 + $0x30] sm:$0xff]  ;;  %s2026_s16 = sshll.u32 %s4113_s24, 6  ;;  %s4155_s14 = sld [smem:[#allocation41_spill]] }
  0x8d   : > { %651 = vadd.xlane.f32.xlu1 %v637_v3  ;;  %647 = vadd.xlane.f32.xlu0 %v635_v4  ;;  %v3086_v60 = vld [vmem:[#allocation8 + $0x40] sm:$0xff]  ;;  %v3089_v62 = vld [vmem:[#allocation8 + $0x38] sm:$0xff]  ;;  %s4156_s21 = sld [smem:[#allocation23_spill]]  ;;  %s2045_s29 = sshll.u32 %s4113_s24, 3 }
  0x8e   : > { %659 = vadd.xlane.f32.xlu2 %v641_v5  ;;  %907 = vmatpush.msra.mxu0 %v898_v49 }
  0x8f   : > { %971 = vmatpush.msra.mxu1 %v3071_v50  ;;  %2056 = vmatpush.msra.mxu3 %v898_v49 }
  0x90   : > { %908 = vmatpush.msra.mxu0 %v897_v51 }
  0x91   : > { %972 = vmatpush.msra.mxu1 %v3074_v52  ;;  %2057 = vmatpush.msra.mxu3 %v897_v51 }
  0x92   : > { %909 = vmatpush.msra.mxu0 %v896_v53 }
  0x93   : > { %973 = vmatpush.msra.mxu1 %v3077_v54  ;;  %2058 = vmatpush.msra.mxu3 %v896_v53  ;;  %s2046_s25 = sshll.u32 %s4156_s21, 5 }
  0x94   : > { %910 = vmatpush.msra.mxu0 %v895_v55  ;;  %s1828_s19 = sadd.s32 %s2046_s25, %s2045_s29 }
  0x95   : > { %655 = vadd.xlane.f32.xlu0 %v639_v6  ;;  %661 = vadd.xlane.f32.xlu1 %v642_v7  ;;  %s2047_s8 = sshll.u32 %s1828_s19, 3 }
  0x96   : > { %974 = vmatpush.msra.mxu1 %v3080_v56  ;;  %2059 = vmatpush.msra.mxu3 %v895_v55 }
  0x97   : > { %911 = vmatpush.msra.mxu0 %v894_v57 }
  0x98   : > { %975 = vmatpush.msra.mxu1 %v3083_v58  ;;  %2060 = vmatpush.msra.mxu3 %v894_v57 }
  0x99   : > { %912 = vmatpush.msra.mxu0 %v893_v59 }
  0x9a   : > { %976 = vmatpush.msra.mxu1 %v3086_v60  ;;  %2061 = vmatpush.msra.mxu3 %v893_v59 }
  0x9b   : > { %913 = vmatpush.msra.mxu0 %v892_v61 }
  0x9c   : > { %977 = vmatpush.msra.mxu1 %v3089_v62  ;;  %2062 = vmatpush.msra.mxu3 %v892_v61 }
  0x9d   : > { %657 = vadd.xlane.f32.xlu0 %v640_v8  ;;  %914 = vmatpush.msra.mxu0 %v891_v63 }
  0x9e   : > { %2063 = vmatpush.msra.mxu3 %v891_v63 }
  0xf8   : > { %v650_v9 = vpop.xlane.xlu1 %649  ;;  %v646_v10 = vpop.xlane.xlu0 %645 }
  0xf9   : > { %v3002_v11 = vmul.f32 0.020833334, %v646_v10  ;;  %v654_v12 = vpop.xlane.xlu2 %653  ;;  %v3004_v13 = vmul.f32 0.020833334, %v650_v9  ;;  %v887_v9 = vld [vmem:[#allocation7 + $0x10] sm:$0xff] }
  0xfa   : > { %v3028_v26 = vmul.f32 0.020833334, %v654_v12  ;;  %v3106_v10 = vld [vmem:[#allocation8 + $0x10] sm:$0xff] }
  0xfb   : > { %v3007_v14 = vsub.f32 %v634_v1, %v3002_v11  ;;  %v3012_v16 = vsub.f32 %v636_v0, %v3004_v13  ;;  %v3092_v0 = vld [vmem:[#allocation8 + $0x30] sm:$0xff]  ;;  %v890_v1 = vld [vmem:[#allocation7 + $0x28] sm:$0xff] }
  0xfc   : > { %v3038_v31 = vsub.f32 %v638_v2, %v3028_v26  ;;  %978 = vmatpush.msra.mxu1 %v3092_v0  ;;  %v3095_v2 = vld [vmem:[#allocation8 + $0x28] sm:$0xff]  ;;  %915 = vmatpush.msra.mxu0 %v890_v1 }
  0xfd   : > { %v681_v15 = vmul.f32 %v3007_v14, %v3007_v14  ;;  %v683_v23 = vmul.f32 %v3012_v16, %v3012_v16  ;;  %2064 = vmatpush.msra.mxu3 %v890_v1 }
  0xfe   : > { %v685_v36 = vmul.f32 %v3038_v31, %v3038_v31  ;;  %979 = vmatpush.msra.mxu1 %v3095_v2 }
  0xff   : > { %690 = vadd.xlane.f32.xlu2 %v681_v15 }
 0x100   : > { %v652_v17 = vpop.xlane.xlu1 %651  ;;  %v648_v18 = vpop.xlane.xlu0 %647 }
 0x101   : > { %v3014_v19 = vmul.f32 0.020833334, %v652_v17  ;;  %v3016_v20 = vmul.f32 0.020833334, %v648_v18  ;;  %v660_v21 = vpop.xlane.xlu2 %659  ;;  %v886_v17 = vld [vmem:[#allocation7 + $0x8] sm:$0xff] }
 0x102   : > { %v3026_v25 = vmul.f32 0.020833334, %v660_v21  ;;  %v3109_v18 = vld [vmem:[#allocation8 + $0x8] sm:$0xff] }
 0x103   : > { %v3019_v22 = vsub.f32 %v637_v3, %v3014_v19  ;;  %v3024_v24 = vsub.f32 %v635_v4, %v3016_v20  ;;  %v708_v3 = vmul.f32 80.0, %v3002_v11  ;;  %v889_v4 = vld [vmem:[#allocation7 + $0x20] sm:$0xff] }
 0x104   : > { %v3035_v29 = vsub.f32 %v641_v5, %v3026_v25  ;;  %v3099_v5 = vld [vmem:[#allocation8 + $0x20] sm:$0xff]  ;;  %916 = vmatpush.msra.mxu0 %v889_v4  ;;  %2065 = vmatpush.msra.mxu3 %v889_v4 }
 0x105   : > { %v684_v27 = vmul.f32 %v3019_v22, %v3019_v22  ;;  %v682_v28 = vmul.f32 %v3024_v24, %v3024_v24  ;;  %980 = vmatpush.msra.mxu1 %v3099_v5 }
 0x106   : > { %v688_v34 = vmul.f32 %v3035_v29, %v3035_v29 }
 0x107   : > { %696 = vadd.xlane.f32.xlu0 %v684_v27  ;;  %694 = vadd.xlane.f32.xlu2 %v683_v23  ;;  %v710_v23 = vmul.f32 80.0, %v3004_v13  ;;  %v885_v27 = vld [vmem:[#allocation7] sm:$0xff] }
 0x108   : > { %692 = vadd.xlane.f32.xlu1 %v682_v28  ;;  %v656_v30 = vpop.xlane.xlu0 %655  ;;  %v662_v33 = vpop.xlane.xlu1 %661  ;;  %v3114_v28 = vld [vmem:[#allocation8] sm:$0xff] }
 0x109   : > { %v3040_v32 = vmul.f32 0.020833334, %v656_v30  ;;  %v3049_v37 = vmul.f32 0.020833334, %v662_v33  ;;  %v709_v30 = vmul.f32 80.0, %v3016_v20 }
 0x10b   : > { %v3045_v35 = vsub.f32 %v639_v6, %v3040_v32  ;;  %v3054_v40 = vsub.f32 %v642_v7, %v3049_v37  ;;  %v888_v6 = vld [vmem:[#allocation7 + $0x18] sm:$0xff] }
 0x10c   : > { %v3102_v7 = vld [vmem:[#allocation8 + $0x18] sm:$0xff]  ;;  %917 = vmatpush.msra.mxu0 %v888_v6  ;;  %2066 = vmatpush.msra.mxu3 %v888_v6 }
 0x10d   : > { %v686_v38 = vmul.f32 %v3045_v35, %v3045_v35  ;;  %v689_v43 = vmul.f32 %v3054_v40, %v3054_v40  ;;  %981 = vmatpush.msra.mxu1 %v3102_v7 }
 0x10e   : > { %918 = vmatpush.msra.mxu0 %v887_v9  ;;  %2067 = vmatpush.msra.mxu3 %v887_v9 }
 0x10f   : > { %704 = vadd.xlane.f32.xlu2 %v688_v34  ;;  %700 = vadd.xlane.f32.xlu0 %v686_v38 }
 0x110   : > { %698 = vadd.xlane.f32.xlu1 %v685_v36  ;;  %v658_v39 = vpop.xlane.xlu0 %657  ;;  %982 = vmatpush.msra.mxu1 %v3106_v10  ;;  %v719_v36 = vmul.f32 %v710_v23, %v3004_v13  ;;  %v715_v13 = vmul.f32 80.0, %v3026_v25 }
 0x111   : > { %v3056_v41 = vmul.f32 0.020833334, %v658_v39  ;;  %919 = vmatpush.msra.mxu0 %v886_v17  ;;  %2068 = vmatpush.msra.mxu3 %v886_v17 }
 0x112   : > { %983 = vmatpush.msra.mxu1 %v3109_v18  ;;  %v724_v1 = vmul.f32 %v715_v13, %v3026_v25 }
 0x113   : > { %v3059_v42 = vsub.f32 %v640_v8, %v3056_v41  ;;  %v717_v8 = vmul.f32 %v708_v3, %v3002_v11  ;;  %v711_v11 = vmul.f32 80.0, %v3014_v19  ;;  %920 = vmatpush.msra.mxu0 %v885_v27  ;;  %2069 = vmatpush.msra.mxu3 %v885_v27  ;;  %v716_v27 = vmul.f32 80.0, %v3049_v37 }
 0x114   : > { %984 = vmatpush.msra.mxu1 %v3114_v28 }
 0x115   : > { %v687_v44 = vmul.f32 %v3059_v42, %v3059_v42  ;;  %2070 = vmatpush.msrb.mxu3 %v3065_v46  ;;  %v720_v38 = vmul.f32 %v711_v11, %v3014_v19  ;;  %v712_v19 = vmul.f32 80.0, %v3028_v26 }
 0x117   : > { %702 = vadd.xlane.f32.xlu2 %v687_v44  ;;  %2071 = vmatpush.msrb.mxu3 %v3068_v48  ;;  %v713_v48 = vmul.f32 80.0, %v3040_v32  ;;  %v721_v6 = vmul.f32 %v712_v19, %v3028_v26 }
 0x118   : > { %706 = vadd.xlane.f32.xlu1 %v689_v43  ;;  %v718_v43 = vmul.f32 %v709_v30, %v3016_v20 }
 0x119   : > { %2072 = vmatpush.msrb.mxu3 %v3071_v50 }
 0x11b   : > { %2073 = vmatpush.msrb.mxu3 %v3074_v52 }
 0x11d   : > { %2074 = vmatpush.msrb.mxu3 %v3077_v54 }
 0x11f   : > { %2075 = vmatpush.msrb.mxu3 %v3080_v56 }
 0x121   : > { %2076 = vmatpush.msrb.mxu3 %v3083_v58 }
 0x123   : > { %2077 = vmatpush.msrb.mxu3 %v3086_v60 }
 0x125   : > { %2078 = vmatpush.msrb.mxu3 %v3089_v62 }
 0x127   : > { %2079 = vmatpush.msrb.mxu3 %v3092_v0 }
 0x129   : > { %2080 = vmatpush.msrb.mxu3 %v3095_v2 }
 0x12b   : > { %2081 = vmatpush.msrb.mxu3 %v3099_v5 }
 0x12d   : > { %2082 = vmatpush.msrb.mxu3 %v3102_v7 }
 0x12f   : > { %2083 = vmatpush.msrb.mxu3 %v3106_v10 }
 0x131   : > { %2084 = vmatpush.msrb.mxu3 %v3109_v18 }
 0x133   : > { %2085 = vmatpush.msrb.mxu3 %v3114_v28 }
 0x172   : > { %v691_v12 = vpop.xlane.xlu2 %690 }
 0x173   : > { %v726_v15 = vsub.f32 %v691_v12, %v717_v8  ;;  %v722_v12 = vmul.f32 %v713_v48, %v3040_v32 }
 0x175   : > { %v735_v21 = vmul.f32 0.020833334, %v726_v15 }
 0x177   : > { %v744_v33 = vmax.f32 %v735_v21, 0.0 }
 0x179   : > { %v3119_v34 = vadd.f32 1e-05, %v744_v33  ;;  %v714_v33 = vmul.f32 80.0, %v3056_v41 }
 0x17a   : > { %v695_v39 = vpop.xlane.xlu2 %694  ;;  %v697_v44 = vpop.xlane.xlu0 %696 }
 0x17b   : > { %2243 = vrsqrt.f32 %v3119_v34  ;;  %v728_v45 = vsub.f32 %v695_v39, %v719_v36  ;;  %v693_v47 = vpop.xlane.xlu1 %692  ;;  %v729_v49 = vsub.f32 %v697_v44, %v720_v38  ;;  %vm768_vm1 = vweird.f32 %v3119_v34 }
 0x17c   : > { %v727_v51 = vsub.f32 %v693_v47, %v718_v43  ;;  %v725_v47 = vmul.f32 %v716_v27, %v3049_v37  ;;  %v723_v0 = vmul.f32 %v714_v33, %v3056_v41 }
 0x17d   : > { %v737_v46 = vmul.f32 0.020833334, %v728_v45  ;;  %v738_v53 = vmul.f32 0.020833334, %v729_v49 }
 0x17e   : > { %v736_v55 = vmul.f32 0.020833334, %v727_v51 }
 0x17f   : > { %v746_v20 = vmax.f32 %v737_v46, 0.0  ;;  %v747_v57 = vmax.f32 %v738_v53, 0.0 }
 0x180   : > { %v745_v59 = vmax.f32 %v736_v55, 0.0 }
 0x181   : > { %v3132_v61 = vpop.eup %2243  ;;  %v3134_v63 = vadd.f32 1e-05, %v746_v20  ;;  %v3136_v50 = vadd.f32 1e-05, %v747_v57  ;;  %v3188_v20 = vld [vmem:[%s4109_s27] ss:$0 sm:$0xff] }
 0x182   : > { %v763_v3 = vmul.f32 %v3132_v61, %v3119_v34  ;;  %v3141_v4 = vadd.f32 1e-05, %v745_v59  ;;  %v705_v52 = vpop.xlane.xlu2 %704  ;;  %v701_v8 = vpop.xlane.xlu0 %700  ;;  %vm769_vm0 = vweird.f32 %v3132_v61  ;;  %s4158_s27 = sld [smem:[#allocation42_spill]] }
 0x183   : > { %2245 = vrsqrt.f32 %v3134_v63  ;;  %v733_v54 = vsub.f32 %v705_v52, %v724_v1  ;;  %v699_v9 = vpop.xlane.xlu1 %698  ;;  %v731_v26 = vsub.f32 %v701_v8, %v722_v12  ;;  %vm770_vm2 = vmor %vm768_vm1, %vm769_vm0  ;;  %vm788_vm7 = vweird.f32 %v3134_v63 }
 0x184   : > { %v764_v15 = vmul.f32 %v3132_v61, %v763_v3  ;;  %2247 = vrsqrt.f32 %v3141_v4  ;;  %v730_v25 = vsub.f32 %v699_v9, %v721_v6  ;;  %vm778_vm4 = vweird.f32 %v3141_v4 }
 0x185   : > { %2249 = vrsqrt.f32 %v3136_v50  ;;  %v742_v17 = vmul.f32 0.020833334, %v733_v54  ;;  %v740_v11 = vmul.f32 0.020833334, %v731_v26  ;;  %vm798_vm13 = vweird.f32 %v3136_v50 }
 0x186   : > { %v765_v21 = vmul.f32 0.5, %v764_v15  ;;  %v739_v23 = vmul.f32 0.020833334, %v730_v25 }
 0x187   : > { %v751_v56 = vmax.f32 %v742_v17, 0.0  ;;  %v749_v45 = vmax.f32 %v740_v11, 0.0 }
 0x188   : > { %v766_v32 = vsub.f32 1.5, %v765_v21  ;;  %v748_v30 = vmax.f32 %v739_v23, 0.0  ;;  %s1830_s6 = scalar_lea.hbm %s4158_s27, %s2047_s8 }
 0x189   : > { %v3155_v36 = vpop.eup %2245  ;;  %v3157_v58 = vadd.f32 1e-05, %v751_v56  ;;  %v3191_v2 = vadd.f32 1e-05, %v749_v45 }
 0x18a   : > { %v3159_v38 = vpop.eup %2247  ;;  %v783_v60 = vmul.f32 %v3155_v36, %v3134_v63  ;;  %v3164_v39 = vadd.f32 1e-05, %v748_v30  ;;  %v767_v43 = vmul.f32 %v3132_v61, %v766_v32  ;;  %v703_v51 = vpop.xlane.xlu2 %702  ;;  %vm789_vm5 = vweird.f32 %v3155_v36 }
 0x18b   : > { %v3168_v44 = vpop.eup %2249  ;;  %v773_v62 = vmul.f32 %v3159_v38, %v3141_v4  ;;  %2251 = vrsqrt.f32 %v3157_v58  ;;  %v707_v49 = vpop.xlane.xlu1 %706  ;;  %v732_v19 = vsub.f32 %v703_v51, %v723_v0  ;;  %vm779_vm3 = vweird.f32 %v3159_v38  ;;  %vm3225_vm8 = vmor %vm788_vm7, %vm789_vm5 }
 0x18c   : > { %v784_v46 = vmul.f32 %v3155_v36, %v783_v60  ;;  %2253 = vrsqrt.f32 %v3164_v39  ;;  %v734_v13 = vsub.f32 %v707_v49, %v725_v47  ;;  %v793_v37 = vmul.f32 %v3168_v44, %v3136_v50  ;;  %vm780_vm6 = vmor %vm778_vm4, %vm779_vm3 }
 0x18d   : > { %v774_v53 = vmul.f32 %v3159_v38, %v773_v62  ;;  %v771_v34 = vsel %vm770_vm2, %v3132_v61, %v767_v43  ;;  %v741_v52 = vmul.f32 0.020833334, %v732_v19  ;;  %v3198_v61 = vld [vmem:[%s4110_s5] ss:$0 sm:$0xff]  ;;  %2255 = vrsqrt.f32 %v3191_v2  ;;  %s1833_s5 = sshll.u32 %s1830_s6, 4  ;;  %s1834_s5 = int_to_ptr.hbm [resolvable:$true] %s1833_s5 }
 0x18e   : > { %v785_v55 = vmul.f32 0.5, %v784_v46  ;;  %v743_v57 = vmul.f32 0.020833334, %v734_v13  ;;  %v852_v48 = vmul.f32 %v771_v34, %v3007_v14  ;;  %v794_v8 = vmul.f32 %v3168_v44, %v793_v37 }
 0x18f   : > { %v775_v41 = vmul.f32 0.5, %v774_v53  ;;  %v750_v10 = vmax.f32 %v741_v52, 0.0  ;;  %vm838_vm10 = vweird.f32 %v3157_v58  ;;  %vm799_vm12 = vweird.f32 %v3168_v44 }
 0x190   : > { %v752_v3 = vmax.f32 %v743_v57, 0.0  ;;  %v786_v5 = vsub.f32 1.5, %v785_v55  ;;  %v864_v7 = vmul.f32 %v3188_v20, %v852_v48  ;;  %v795_v17 = vmul.f32 0.5, %v794_v8  ;;  %vm800_vm14 = vmor %vm798_vm13, %vm799_vm12 }
 0x191   : > { %v2252_v59 = vpop.eup %2251  ;;  %v776_v1 = vsub.f32 1.5, %v775_v41  ;;  %v3230_v32 = vadd.f32 1e-05, %v750_v10  ;;  %vm808_vm3 = vweird.f32 %v3164_v39 }
 0x192   : > { %v3200_v6 = vpop.eup %2253  ;;  %v833_v54 = vmul.f32 %v2252_v59, %v3157_v58  ;;  %v3207_v14 = vadd.f32 1e-05, %v752_v3  ;;  %v876_v25 = vadd.f32 %v3198_v61, %v864_v7  ;;  %v787_v4 = vmul.f32 %v3155_v36, %v786_v5 }
 0x193   : > { %v777_v12 = vmul.f32 %v3159_v38, %v776_v1  ;;  %v803_v15 = vmul.f32 %v3200_v6, %v3164_v39  ;;  %v3223_v56 = vpop.eup %2255  ;;  %vm839_vm9 = vweird.f32 %v2252_v59  ;;  %v796_v28 = vsub.f32 1.5, %v795_v17 }
 0x194   : > { %v834_v9 = vmul.f32 %v2252_v59, %v833_v54  ;;  %2257 = vrsqrt.f32 %v3207_v14  ;;  %921 = vmatmul.f32.vlgmr.msra.gmra.mxu0 %v876_v25  ;;  %985 = vmatmul.f32.vlgmr.msra.gmra.mxu1 %v876_v25  ;;  %v791_v63 = vsel %vm3225_vm8, %v3155_v36, %v787_v4  ;;  %vm840_vm11 = vmor %vm838_vm10, %vm839_vm9  ;;  %vm848_vm0 = vweird.f32 %v3207_v14  ;;  %v3279_v4 = vld [vmem:[#allocation10] ss:$0 sm:$0xff] }
 0x195   : > { %v781_v18 = vsel %vm780_vm6, %v3159_v38, %v777_v12  ;;  %v804_v27 = vmul.f32 %v3200_v6, %v803_v15  ;;  %v813_v38 = vmul.f32 %v3223_v56, %v3191_v2  ;;  %2259 = vrsqrt.f32 %v3230_v32 }
 0x196   : > { %v835_v26 = vmul.f32 0.5, %v834_v9  ;;  %v853_v23 = vmul.f32 %v781_v18, %v3024_v24  ;;  %v854_v45 = vmul.f32 %v791_v63, %v3012_v16  ;;  %v797_v58 = vmul.f32 %v3168_v44, %v796_v28 }
 0x197   : > { %v805_v62 = vmul.f32 0.5, %v804_v27  ;;  %v814_v53 = vmul.f32 %v3223_v56, %v813_v38  ;;  %vm809_vm1 = vweird.f32 %v3200_v6  ;;  %vm819_vm5 = vweird.f32 %v3223_v56 }
 0x198   : > { %v836_v21 = vsub.f32 1.5, %v835_v26  ;;  %v865_v30 = vmul.f32 %v3188_v20, %v853_v23  ;;  %v866_v16 = vmul.f32 %v3188_v20, %v854_v45  ;;  %vm810_vm4 = vmor %vm808_vm3, %vm809_vm1  ;;  %vm818_vm6 = vweird.f32 %v3191_v2 }
 0x199   : > { %v806_v0 = vsub.f32 1.5, %v805_v62  ;;  %v815_v41 = vmul.f32 0.5, %v814_v53  ;;  %vm820_vm7 = vmor %vm818_vm6, %vm819_vm5  ;;  %vm828_vm9 = vweird.f32 %v3230_v32  ;;  %v1193_v63 = vlaneseq }
 0x19a   : > { %v837_v33 = vmul.f32 %v2252_v59, %v836_v21  ;;  %v2258_v24 = vpop.eup %2257  ;;  %v877_v43 = vadd.f32 %v3198_v61, %v865_v30  ;;  %v878_v19 = vadd.f32 %v3198_v61, %v866_v16 }
 0x19b   : > { %v843_v60 = vmul.f32 %v2258_v24, %v3207_v14  ;;  %vm849_vm15 = vweird.f32 %v2258_v24  ;;  %v2260_v37 = vpop.eup %2259  ;;  %v816_v52 = vsub.f32 1.5, %v815_v41  ;;  %v3291_v45 = vshrl.u32 %v1193_v63, 7 }
 0x19c   : > { %v841_v47 = vsel %vm840_vm11, %v2252_v59, %v837_v33  ;;  %924 = vmatmul.f32.gmra.mxu0 %v877_v43  ;;  %988 = vmatmul.f32.gmra.mxu1 %v877_v43  ;;  %vm850_vm2 = vmor %vm848_vm0, %vm849_vm15  ;;  %v823_v57 = vmul.f32 %v2260_v37, %v3230_v32  ;;  %v807_v59 = vmul.f32 %v3200_v6, %v806_v0  ;;  %vm829_vm8 = vweird.f32 %v2260_v37 }
 0x19d   : > { %v844_v36 = vmul.f32 %v2258_v24, %v843_v60  ;;  %v859_v49 = vmul.f32 %v841_v47, %v3035_v29  ;;  %v801_v29 = vsel %vm800_vm14, %v3168_v44, %v797_v58  ;;  %v817_v39 = vmul.f32 %v3223_v56, %v816_v52  ;;  %vm830_vm10 = vmor %vm828_vm9, %vm829_vm8 }
 0x19e   : > { %v855_v34 = vmul.f32 %v801_v29, %v3019_v22  ;;  %v824_v5 = vmul.f32 %v2260_v37, %v823_v57  ;;  %v811_v22 = vsel %vm810_vm4, %v3200_v6, %v807_v59  ;;  %vm1296_vm8 = vcmp.lt.s32.totalorder %v3291_v45, 7 }
 0x19f   : > { %v845_v51 = vmul.f32 0.5, %v844_v36  ;;  %v871_v46 = vmul.f32 %v3188_v20, %v859_v49  ;;  %v856_v14 = vmul.f32 %v811_v22, %v3038_v31  ;;  %v821_v9 = vsel %vm820_vm7, %v3223_v56, %v817_v39 }
 0x1a0   : > { %v867_v1 = vmul.f32 %v3188_v20, %v855_v34  ;;  %v857_v31 = vmul.f32 %v821_v9, %v3045_v35  ;;  %v3293_v36 = vstv %s2026_s16  ;;  %s1817_s16 = scalar_lea.sflag [#allocation4], %s2964_s20 }
 0x1a1   : > { %v846_v13 = vsub.f32 1.5, %v845_v51  ;;  %v883_v55 = vadd.f32 %v3198_v61, %v871_v46  ;;  %v868_v7 = vmul.f32 %v3188_v20, %v856_v14  ;;  %v1195_v46 = vadd.s32 8, %v3291_v45 }
 0x1a2   : > { %v879_v54 = vadd.f32 %v3198_v61, %v867_v1  ;;  %v869_v2 = vmul.f32 %v3188_v20, %v857_v31  ;;  %v1205_v0 = vadd.s32 %v3293_v36, %v3291_v45  ;;  %v1196_v14 = vadd.s32 16, %v3291_v45 }
 0x1a3   : > { %942 = vmatmul.f32.vlgmr.msra.gmra.mxu3 %v883_v55  ;;  %v847_v50 = vmul.f32 %v2258_v24, %v846_v13  ;;  %v880_v12 = vadd.f32 %v3198_v61, %v868_v7  ;;  %v1206_v34 = vadd.s32 %v3293_v36, %v1195_v46  ;;  %v3376_v46 = vld [vmem:[%s4121_s26] ss:$0 sm:$0xff] }
 0x1a4   : > { %927 = vmatmul.f32.gmra.mxu0 %v878_v19  ;;  %991 = vmatmul.f32.gmra.mxu1 %v878_v19  ;;  %v881_v25 = vadd.f32 %v3198_v61, %v869_v2  ;;  %v2027_v41 = vadd.s32 4294967295, %v1205_v0 }
 0x1a5   : > { %v851_v48 = vsel %vm850_vm2, %v2258_v24, %v847_v50 }
 0x1a6   : > { %v860_v44 = vmul.f32 %v851_v48, %v3054_v40  ;;  %v825_v40 = vmul.f32 0.5, %v824_v5  ;;  %vm1223_vm14 = vcmp.ge.s32.totalorder %v2027_v41, 0  ;;  %vm1232_vm15 = vcmp.lt.s32.totalorder %v2027_v41, 200 }
 0x1a7   : > { %vm3351_vm7 = vmand %vm1223_vm14, %vm1232_vm15 }
 0x1a8   : > { %v872_v3 = vmul.f32 %v3188_v20, %v860_v44  ;;  %v826_v6 = vsub.f32 1.5, %v825_v40 }
 0x1aa   : > { %v884_v8 = vadd.f32 %v3198_v61, %v872_v3  ;;  %v827_v15 = vmul.f32 %v2260_v37, %v826_v6 }
 0x1ac   : > { %945 = vmatmul.f32.gmra.mxu3 %v884_v8  ;;  %930 = vmatmul.f32.gmra.mxu0 %v879_v54  ;;  %v831_v10 = vsel %vm830_vm10, %v2260_v37, %v827_v15  ;;  %vm1332_vm10 = vcmp.lt.s32.totalorder %v3291_v45, 6 }
 0x1ad   : > { %994 = vmatmul.f32.gmra.mxu1 %v879_v54  ;;  %v858_v17 = vmul.f32 %v831_v10, %v3059_v42  ;;  %v2028_v54 = vadd.s32 4294967295, %v1206_v34 }
 0x1af   : > { %v870_v26 = vmul.f32 %v3188_v20, %v858_v17  ;;  %vm1224_vm2 = vcmp.ge.s32.totalorder %v2028_v54, 0  ;;  %vm1233_vm6 = vcmp.lt.s32.totalorder %v2028_v54, 200 }
 0x1b0   : > { %vm3359_vm9 = vmand %vm1224_vm2, %vm1233_vm6 }
 0x1b1   : > { %v882_v35 = vadd.f32 %v3198_v61, %v870_v26 }
 0x1b4   : > { %1006 = vmatmul.f32.vlgmr.msrb.gmra.mxu3 %v883_v55  ;;  %933 = vmatmul.f32.gmra.mxu0 %v880_v12  ;;  %v3305_v55 = vld [vmem:[%s4114_s2] ss:$0 sm:$0xff] }
 0x1b5   : > { %997 = vmatmul.f32.gmra.mxu1 %v880_v12 }
 0x1bc   : > { %1009 = vmatmul.f32.gmra.mxu3 %v884_v8  ;;  %936 = vmatmul.f32.gmra.mxu0 %v881_v25 }
 0x1bd   : > { %1000 = vmatmul.f32.gmra.mxu1 %v881_v25 }
 0x1c4   : > { %939 = vmatmul.f32.gmra.mxu0 %v882_v35 }
 0x1c5   : > { %1003 = vmatmul.f32.gmra.mxu1 %v882_v35 }
 0x211   : > { %v922_v18 = vpop.f32.mrf.mxu0  ;;  %v986_v21 = vpop.f32.mrf.mxu1 }
 0x212   : > { %v987_v23 = vadd.f32 %v3279_v4, %v986_v21  ;;  %v923_v52 = vadd.f32 %v3305_v55, %v922_v18  ;;  %v1207_v18 = vadd.s32 %v3293_v36, %v1196_v14 }
 0x214   : > { %v2017_v56 = vmul.f32 -1.442695, %v987_v23 }
 0x216   : > { %2261 = vpow2.f32 %v2017_v56 }
 0x219   : > { %v925_v11 = vpop.f32.mrf.mxu0  ;;  %v989_v27 = vpop.f32.mrf.mxu1 }
 0x21a   : > { %v990_v42 = vadd.f32 %v3279_v4, %v989_v27  ;;  %v926_v9 = vadd.f32 %v3305_v55, %v925_v11 }
 0x21c   : > { %v2262_v32 = vpop.eup %2261  ;;  %v2018_v28 = vmul.f32 -1.442695, %v990_v42 }
 0x21d   : > { %v1040_v20 = vadd.f32 1.0, %v2262_v32 }
 0x21e   : > { %2263 = vpow2.f32 %v2018_v28 }
 0x21f   : > { %2265 = vrcp.f32 %v1040_v20  ;;  %v1060_v44 = vand.u32 2147483648, %v1040_v20  ;;  %vm1054_vm12 = vweird.f32 %v1040_v20  ;;  %v1058_v3 = vand.u32 2147483647, %v1040_v20 }
 0x221   : > { %v3283_v61 = vpop.f32.mrf.mxu0  ;;  %v992_v30 = vpop.f32.mrf.mxu1  ;;  %v1061_v6 = vor.u32 1.1754944e-38, %v1060_v44  ;;  %vm1059_vm1 = vcmp.eq.f32.partialorder %v1058_v3, 8.507059e+37 }
 0x222   : > { %v993_v33 = vadd.f32 %v3279_v4, %v992_v30  ;;  %v3343_v28 = vadd.f32 %v3305_v55, %v3283_v61 }
 0x224   : > { %v2264_v24 = vpop.eup %2263  ;;  %v2019_v38 = vmul.f32 -1.442695, %v993_v33 }
 0x225   : > { %v2266_v43 = vpop.eup %2265  ;;  %v3289_v62 = vadd.f32 1.0, %v2264_v24 }
 0x226   : > { %v3287_v60 = vpop.f32.mrf.mxu3  ;;  %v1050_v47 = vmul.f32 %v2266_v43, %v1040_v20  ;;  %2267 = vpow2.f32 %v2019_v38  ;;  %vm1055_vm11 = vweird.f32 %v2266_v43 }
 0x227   : > { %2269 = vrcp.f32 %v3289_v62  ;;  %vm3317_vm13 = vmor %vm1054_vm12, %vm1055_vm11  ;;  %v1073_v12 = vand.u32 2147483647, %v3289_v62  ;;  %v1075_v31 = vand.u32 2147483648, %v3289_v62  ;;  %vm1069_vm3 = vweird.f32 %v3289_v62 }
 0x228   : > { %v1051_v49 = vsub.f32 1.0, %v1050_v47  ;;  %v3347_v30 = vadd.f32 %v3305_v55, %v3287_v60  ;;  %v3364_v60 = vadd.s32 4294967295, %v1207_v18 }
 0x229   : > { %v3296_v58 = vpop.f32.mrf.mxu0  ;;  %vm1074_vm5 = vcmp.eq.f32.partialorder %v1073_v12, 8.507059e+37  ;;  %v1076_v56 = vor.u32 1.1754944e-38, %v1075_v31  ;;  %v3418_v12 = vld [vmem:[%s4121_s26 + $0x1] ss:$0 sm:$0xff] }
 0x22a   : > { %v995_v51 = vpop.f32.mrf.mxu1  ;;  %v1052_v53 = vmul.f32 %v2266_v43, %v1051_v49  ;;  %v3371_v49 = vadd.f32 %v3305_v55, %v3296_v58  ;;  %vm1225_vm12 = vcmp.ge.s32.totalorder %v3364_v60, 0 }
 0x22b   : > { %v996_v16 = vadd.f32 %v3279_v4, %v995_v51 }
 0x22c   : > { %v2268_v13 = vpop.eup %2267  ;;  %v1053_v59 = vadd.f32 %v2266_v43, %v1052_v53 }
 0x22d   : > { %v2020_v29 = vmul.f32 -1.442695, %v996_v16  ;;  %v2270_v37 = vpop.eup %2269  ;;  %v3307_v50 = vadd.f32 1.0, %v2268_v13 }
 0x22e   : > { %v1065_v57 = vmul.f32 %v2270_v37, %v3289_v62  ;;  %v1057_v7 = vsel %vm3317_vm13, %v2266_v43, %v1053_v59  ;;  %vm1070_vm0 = vweird.f32 %v2270_v37  ;;  %v1197_v62 = vadd.s32 24, %v3291_v45 }
 0x22f   : > { %v946_v19 = vpop.f32.mrf.mxu3  ;;  %2271 = vpow2.f32 %v2020_v29  ;;  %v1062_v35 = vsel %vm1059_vm1, %v1061_v6, %v1057_v7  ;;  %vm1071_vm4 = vmor %vm1069_vm3, %vm1070_vm0  ;;  %v1090_v11 = vand.u32 2147483648, %v3307_v50  ;;  %vm1084_vm11 = vweird.f32 %v3307_v50 }
 0x230   : > { %v3312_v48 = vadd.f32 %v3305_v55, %v946_v19  ;;  %2273 = vrcp.f32 %v3307_v50  ;;  %v1066_v1 = vsub.f32 1.0, %v1065_v57  ;;  %v1184_v32 = vmul.f32 %v1062_v35, %v923_v52 }
 0x231   : > { %v3321_v22 = vpop.f32.mrf.mxu0  ;;  %v1088_v47 = vand.u32 2147483647, %v3307_v50  ;;  %v3378_v53 = vor.u32 1.1754944e-38, %v1090_v11  ;;  %v1198_v29 = vadd.s32 32, %v3291_v45  ;;  %vm1234_vm13 = vcmp.lt.s32.totalorder %v3364_v60, 200 }
 0x232   : > { %v998_v8 = vpop.f32.mrf.mxu1  ;;  %v1067_v40 = vmul.f32 %v2270_v37, %v1066_v1  ;;  %v1268_v13 = vsel %vm3351_vm7, %v1184_v32, 0.0  ;;  %v3388_v19 = vadd.f32 %v3305_v55, %v3321_v22  ;;  %v1208_v1 = vadd.s32 %v3293_v36, %v1197_v62  ;;  %vm3497_vm6 = vmand %vm1225_vm12, %vm1234_vm13 }
 0x233   : > { %v999_v39 = vadd.f32 %v3279_v4, %v998_v8  ;;  %vm3402_vm14 = vcmp.eq.f32.partialorder %v1088_v47, 8.507059e+37  ;;  %v1279_v5 = vmul.f32 %v3376_v46, %v1268_v13  ;;  %v1287_v22 = vrot.slane %v1268_v13, 1 }
 0x234   : > { %v1068_v2 = vadd.f32 %v2270_v37, %v1067_v40  ;;  %v1323_v40 = vrot.slane %v1268_v13, 2  ;;  %v3427_v18 = vadd.s32 4294967295, %v1208_v1 }
 0x235   : > { %v2272_v15 = vpop.eup %2271  ;;  %v2021_v10 = vmul.f32 -1.442695, %v999_v39  ;;  %v1209_v39 = vadd.s32 %v3293_v36, %v1198_v29  ;;  %v3478_v29 = vld [vmem:[%s4126_s11] ss:$0 sm:$0xff] }
 0x236   : > { %v3330_v25 = vpop.eup %2273  ;;  %v3332_v17 = vadd.f32 1.0, %v2272_v15  ;;  %v1072_v42 = vsel %vm1071_vm4, %v2270_v37, %v1068_v2  ;;  %vm1226_vm3 = vcmp.ge.s32.totalorder %v3427_v18, 0  ;;  %vm1235_vm4 = vcmp.lt.s32.totalorder %v3427_v18, 200 }
 0x237   : > { %v1007_v26 = vpop.f32.mrf.mxu3  ;;  %v1080_v21 = vmul.f32 %v3330_v25, %v3307_v50  ;;  %2275 = vpow2.f32 %v2021_v10  ;;  %v1077_v33 = vsel %vm1074_vm5, %v1076_v56, %v1072_v42  ;;  %vm1085_vm15 = vweird.f32 %v3330_v25  ;;  %v3445_v42 = vld [vmem:[%s4121_s26 + $0x2] ss:$0 sm:$0xff] }
 0x238   : > { %v1008_v23 = vadd.f32 %v3279_v4, %v1007_v26  ;;  %2277 = vrcp.f32 %v3332_v17  ;;  %v1185_v51 = vmul.f32 %v1077_v33, %v926_v9  ;;  %v1105_v52 = vand.u32 2147483648, %v3332_v17  ;;  %vm3431_vm0 = vmor %vm1084_vm11, %vm1085_vm15 }
 0x239   : > { %v1081_v20 = vsub.f32 1.0, %v1080_v21  ;;  %v937_v38 = vpop.f32.mrf.mxu0  ;;  %v1103_v2 = vand.u32 2147483647, %v3332_v17  ;;  %v3447_v50 = vadd.s32 4294967295, %v1209_v39  ;;  %vm1099_vm2 = vweird.f32 %v3332_v17 }
 0x23a   : > { %v2024_v27 = vmul.f32 -1.442695, %v1008_v23  ;;  %v1001_v63 = vpop.f32.mrf.mxu1  ;;  %v3394_v57 = vsel %vm3359_vm9, %v1185_v51, 0.0  ;;  %v3423_v26 = vor.u32 1.1754944e-38, %v1105_v52  ;;  %v3436_v56 = vadd.f32 %v3305_v55, %v937_v38 }
 0x23b   : > { %v1002_v61 = vadd.f32 %v3279_v4, %v1001_v63  ;;  %v1082_v58 = vmul.f32 %v3330_v25, %v1081_v20  ;;  %v1288_v14 = vrot.slane %v3394_v57, 1  ;;  %v1324_v31 = vrot.slane %v3394_v57, 2 }
 0x23c   : > { %2279 = vpow2.f32 %v2024_v27  ;;  %vm3502_vm7 = vcmp.eq.f32.partialorder %v1103_v2, 8.507059e+37 }
 0x23d   : > { %v2276_v0 = vpop.eup %2275  ;;  %v2022_v16 = vmul.f32 -1.442695, %v1002_v61  ;;  %v1083_v7 = vadd.f32 %v3330_v25, %v1082_v58  ;;  %v1304_v27 = vsel %vm1296_vm8, %v1287_v22, %v1288_v14  ;;  %v1340_v33 = vsel %vm1332_vm10, %v1323_v40, %v1324_v31 }
 0x23e   : > { %v3383_v37 = vpop.eup %2277  ;;  %v3390_v34 = vadd.f32 1.0, %v2276_v0  ;;  %v1307_v63 = vmul.f32 %v3418_v12, %v1304_v27  ;;  %v1343_v13 = vmul.f32 %v3445_v42, %v1340_v33 }
 0x23f   : > { %v1010_v41 = vpop.f32.mrf.mxu3  ;;  %v1095_v59 = vmul.f32 %v3383_v37, %v3332_v17  ;;  %2281 = vpow2.f32 %v2022_v16  ;;  %vm1100_vm1 = vweird.f32 %v3383_v37  ;;  %v1087_v24 = vsel %vm3431_vm0, %v3330_v25, %v1083_v7 }
 0x240   : > { %v1011_v44 = vadd.f32 %v3279_v4, %v1010_v41  ;;  %2283 = vrcp.f32 %v3390_v34  ;;  %v1120_v35 = vand.u32 2147483648, %v3390_v34  ;;  %v1118_v62 = vand.u32 2147483647, %v3390_v34  ;;  %vm3556_vm15 = vmor %vm1099_vm2, %vm1100_vm1 }
 0x241   : > { %v1096_v15 = vsub.f32 1.0, %v1095_v59  ;;  %v940_v11 = vpop.f32.mrf.mxu0  ;;  %v1315_v16 = vadd.f32 %v1307_v63, %v1279_v5  ;;  %v1092_v58 = vsel %vm3402_vm14, %v3378_v53, %v1087_v24  ;;  %vm1114_vm5 = vweird.f32 %v3390_v34 }
 0x242   : > { %v2280_v8 = vpop.eup %2279  ;;  %v2025_v54 = vmul.f32 -1.442695, %v1011_v44  ;;  %v1004_v9 = vpop.f32.mrf.mxu1  ;;  %v3468_v47 = vor.u32 1.1754944e-38, %v1120_v35  ;;  %v3472_v51 = vadd.f32 %v3305_v55, %v940_v11  ;;  %v1186_v1 = vmul.f32 %v1092_v58, %v3343_v28 }
 0x243   : > { %v3413_v6 = vadd.f32 1.0, %v2280_v8  ;;  %v1005_v10 = vadd.f32 %v3279_v4, %v1004_v9  ;;  %v1097_v38 = vmul.f32 %v3383_v37, %v1096_v15  ;;  %v1351_v28 = vadd.f32 %v1343_v13, %v1315_v16 }
 0x244   : > { %2285 = vpow2.f32 %v2025_v54  ;;  %vm3515_vm12 = vcmp.eq.f32.partialorder %v1118_v62, 8.507059e+37  ;;  %v3526_v15 = vsel %vm3497_vm6, %v1186_v1, 0.0  ;;  %vm1227_vm6 = vcmp.ge.s32.totalorder %v3447_v50, 0 }
 0x245   : > { %2287 = vrcp.f32 %v3413_v6  ;;  %v2282_v21 = vpop.eup %2281  ;;  %v2023_v4 = vmul.f32 -1.442695, %v1005_v10  ;;  %v1165_v43 = vand.u32 2147483648, %v3413_v6  ;;  %v1163_v41 = vand.u32 2147483647, %v3413_v6 }
 0x246   : > { %v3449_v32 = vpop.eup %2283  ;;  %v3452_v20 = vadd.f32 1.0, %v2282_v21  ;;  %v1098_v3 = vadd.f32 %v3383_v37, %v1097_v38  ;;  %vm1159_vm11 = vweird.f32 %v3413_v6  ;;  %v3522_v9 = vadd.f32 %v3478_v29, %v1351_v28 }
 0x247   : > { %v1110_v61 = vmul.f32 %v3449_v32, %v3390_v34  ;;  %2289 = vpow2.f32 %v2023_v4  ;;  %v3508_v22 = vor.u32 1.1754944e-38, %v1165_v43  ;;  %vm1115_vm9 = vweird.f32 %v3449_v32 }
 0x248   : > { %2291 = vrcp.f32 %v3452_v20  ;;  %v1135_v59 = vand.u32 2147483648, %v3452_v20  ;;  %v1133_v60 = vand.u32 2147483647, %v3452_v20  ;;  %vm1129_vm13 = vweird.f32 %v3452_v20  ;;  %1373 = vadd.xlane.f32.xlu0 %v3522_v9  ;;  %vm3585_vm2 = vmor %vm1114_vm5, %vm1115_vm9 }
 0x249   : > { %v1111_v0 = vsub.f32 1.0, %v1110_v61  ;;  %v1280_v21 = vmul.f32 %v3376_v46, %v3394_v57  ;;  %v1289_v23 = vrot.slane %v3526_v15, 1  ;;  %v1325_v27 = vrot.slane %v3526_v15, 2  ;;  %vm3600_vm5 = vmand %vm1226_vm3, %vm1235_vm4 }
 0x24a   : > { %v2286_v25 = vpop.eup %2285  ;;  %v3530_v10 = vor.u32 1.1754944e-38, %v1135_v59  ;;  %vm3560_vm0 = vcmp.eq.f32.partialorder %v1133_v60, 8.507059e+37  ;;  %v1102_v13 = vsel %vm3556_vm15, %v3383_v37, %v1098_v3  ;;  %vm1236_vm9 = vcmp.lt.s32.totalorder %v3447_v50, 200 }
 0x24b   : > { %v3485_v55 = vpop.eup %2287  ;;  %v3490_v44 = vadd.f32 1.0, %v2286_v25  ;;  %v1112_v8 = vmul.f32 %v3449_v32, %v1111_v0  ;;  %v1303_v24 = vsel %vm1296_vm8, %v1288_v14, %v1289_v23  ;;  %v1339_v14 = vsel %vm1332_vm10, %v1324_v31, %v1325_v27 }
 0x24c   : > { %v1155_v5 = vmul.f32 %v3485_v55, %v3413_v6  ;;  %vm1160_vm14 = vweird.f32 %v3485_v55  ;;  %v1308_v25 = vmul.f32 %v3418_v12, %v1303_v24  ;;  %v1344_v1 = vmul.f32 %v3445_v42, %v1339_v14 }
 0x24d   : > { %2293 = vrcp.f32 %v3490_v44  ;;  %v2290_v54 = vpop.eup %2289  ;;  %v1180_v7 = vand.u32 2147483648, %v3490_v44  ;;  %v1113_v63 = vadd.f32 %v3449_v32, %v1112_v8  ;;  %v1178_v33 = vand.u32 2147483647, %v3490_v44 }
 0x24e   : > { %v1156_v39 = vsub.f32 1.0, %v1155_v5  ;;  %v3528_v2 = vpop.eup %2291  ;;  %v3532_v35 = vadd.f32 1.0, %v2290_v54  ;;  %v1316_v59 = vadd.f32 %v1308_v25, %v1280_v21  ;;  %v1107_v37 = vsel %vm3502_vm7, %v3423_v26, %v1102_v13  ;;  %vm3613_vm7 = vmor %vm1159_vm11, %vm1160_vm14 }
 0x24f   : > { %v1125_v4 = vmul.f32 %v3528_v2, %v3452_v20  ;;  %v3564_v62 = vor.u32 1.1754944e-38, %v1180_v7  ;;  %vm1130_vm1 = vweird.f32 %v3528_v2  ;;  %v1117_v53 = vsel %vm3585_vm2, %v3449_v32, %v1113_v63  ;;  %vm1245_vm11 = vmand %vm1227_vm6, %vm1236_vm9 }
 0x250   : > { %v1157_v11 = vmul.f32 %v3485_v55, %v1156_v39  ;;  %2295 = vrcp.f32 %v3532_v35  ;;  %v1150_v16 = vand.u32 2147483648, %v3532_v35  ;;  %v1352_v52 = vadd.f32 %v1344_v1, %v1316_v59  ;;  %vm3625_vm3 = vmor %vm1129_vm13, %vm1130_vm1 }
 0x251   : > { %v1126_v61 = vsub.f32 1.0, %v1125_v4  ;;  %v1187_v5 = vmul.f32 %v1107_v37, %v3371_v49  ;;  %v1281_v60 = vmul.f32 %v3376_v46, %v3526_v15  ;;  %v1122_v54 = vsel %vm3515_vm12, %v3468_v47, %v1117_v53 }
 0x252   : > { %v3574_v17 = vadd.f32 %v3485_v55, %v1157_v11  ;;  %v3629_v8 = vor.u32 1.1754944e-38, %v1150_v16  ;;  %v1199_v49 = vadd.s32 40, %v3291_v45  ;;  %vm1144_vm4 = vweird.f32 %v3532_v35 }
 0x253   : > { %v3571_v0 = vpop.eup %2293  ;;  %v1127_v31 = vmul.f32 %v3528_v2, %v1126_v61  ;;  %v3641_v20 = vadd.f32 %v3478_v29, %v1352_v52  ;;  %v1148_v7 = vand.u32 2147483647, %v3532_v35  ;;  %v1271_v40 = vsel %vm3600_vm5, %v1187_v5, 0.0 }
 0x254   : > { %v1170_v58 = vmul.f32 %v3571_v0, %v3490_v44  ;;  %v1162_v47 = vsel %vm3613_vm7, %v3485_v55, %v3574_v17  ;;  %v1188_v21 = vmul.f32 %v1122_v54, %v3388_v19  ;;  %v1210_v4 = vadd.s32 %v3293_v36, %v1199_v49 }
 0x255   : > { %v1128_v18 = vadd.f32 %v3528_v2, %v1127_v31  ;;  %vm1175_vm12 = vweird.f32 %v3571_v0  ;;  %1375 = vadd.xlane.f32.xlu1 %v3641_v20  ;;  %v1290_v24 = vrot.slane %v1271_v40, 1  ;;  %v1326_v55 = vrot.slane %v1271_v40, 2 }
 0x256   : > { %v1171_v3 = vsub.f32 1.0, %v1170_v58  ;;  %v3619_v28 = vpop.eup %2295  ;;  %vm3664_vm13 = vcmp.eq.f32.partialorder %v1163_v41, 8.507059e+37  ;;  %v1272_v19 = vsel %vm1245_vm11, %v1188_v21, 0.0  ;;  %v2032_v61 = vadd.s32 4294967295, %v1210_v4 }
 0x257   : > { %v1140_v39 = vmul.f32 %v3619_v28, %v3532_v35  ;;  %v1132_v11 = vsel %vm3625_vm3, %v3528_v2, %v1128_v18  ;;  %vm1145_vm14 = vweird.f32 %v3619_v28  ;;  %vm1174_vm15 = vweird.f32 %v3490_v44 }
 0x258   : > { %v1172_v50 = vmul.f32 %v3571_v0, %v1171_v3  ;;  %v1137_v2 = vsel %vm3560_vm0, %v3530_v10, %v1132_v11  ;;  %v1302_v6 = vsel %vm1296_vm8, %v1289_v23, %v1290_v24  ;;  %v1338_v41 = vsel %vm1332_vm10, %v1325_v27, %v1326_v55  ;;  %vm1146_vm6 = vmor %vm1144_vm4, %vm1145_vm14 }
 0x259   : > { %v1141_v63 = vsub.f32 1.0, %v1140_v39  ;;  %v1291_v14 = vrot.slane %v1272_v19, 1  ;;  %v1309_v17 = vmul.f32 %v3418_v12, %v1302_v6  ;;  %v1282_v16 = vmul.f32 %v3376_v46, %v1271_v40  ;;  %vm1176_vm7 = vmor %vm1174_vm15, %vm1175_vm12 }
 0x25a   : > { %v1327_v43 = vrot.slane %v1272_v19, 2  ;;  %v1189_v10 = vmul.f32 %v1137_v2, %v3436_v56  ;;  %vm3685_vm0 = vcmp.eq.f32.partialorder %v1178_v33, 8.507059e+37  ;;  %v1345_v15 = vmul.f32 %v3445_v42, %v1338_v41 }
 0x25b   : > { %v1142_v25 = vmul.f32 %v3619_v28, %v1141_v63  ;;  %v1301_v23 = vsel %vm1296_vm8, %v1290_v24, %v1291_v14  ;;  %vm1228_vm1 = vcmp.ge.s32.totalorder %v2032_v61, 0  ;;  %vm1237_vm2 = vcmp.lt.s32.totalorder %v2032_v61, 200 }
 0x25c   : > { %v1317_v27 = vadd.f32 %v1309_v17, %v1281_v60  ;;  %v1310_v57 = vmul.f32 %v3418_v12, %v1301_v23  ;;  %v1337_v31 = vsel %vm1332_vm10, %v1326_v55, %v1327_v43  ;;  %vm1246_vm5 = vmand %vm1228_vm1, %vm1237_vm2  ;;  %v1173_v33 = vadd.f32 %v3571_v0, %v1172_v50 }
 0x25d   : > { %v1143_v56 = vadd.f32 %v3619_v28, %v1142_v25  ;;  %v1346_v58 = vmul.f32 %v3445_v42, %v1337_v31  ;;  %v1273_v59 = vsel %vm1246_vm5, %v1189_v10, 0.0  ;;  %v1283_v1 = vmul.f32 %v3376_v46, %v1272_v19 }
 0x25e   : > { %v1353_v37 = vadd.f32 %v1345_v15, %v1317_v27  ;;  %v1318_v34 = vadd.f32 %v1310_v57, %v1282_v16  ;;  %v1292_v53 = vrot.slane %v1273_v59, 1  ;;  %v1328_v26 = vrot.slane %v1273_v59, 2 }
 0x25f   : > { %v1147_v18 = vsel %vm1146_vm6, %v3619_v28, %v1143_v56  ;;  %vm1149_vm9 = vcmp.eq.f32.partialorder %v1148_v7, 8.507059e+37  ;;  %v1200_v3 = vadd.s32 48, %v3291_v45  ;;  %v1201_v52 = vadd.s32 56, %v3291_v45 }
 0x260   : > { %v3707_v5 = vadd.f32 %v3478_v29, %v1353_v37  ;;  %v1354_v32 = vadd.f32 %v1346_v58, %v1318_v34  ;;  %v1300_v60 = vsel %vm1296_vm8, %v1291_v14, %v1292_v53  ;;  %v1336_v35 = vsel %vm1332_vm10, %v1327_v43, %v1328_v26 }
 0x261   : > { %v1311_v54 = vmul.f32 %v3418_v12, %v1300_v60  ;;  %v1152_v49 = vsel %vm1149_vm9, %v3629_v8, %v1147_v18  ;;  %v1167_v28 = vsel %vm3664_vm13, %v3508_v22, %v1162_v47  ;;  %v1211_v39 = vadd.s32 %v3293_v36, %v1200_v3 }
 0x262   : > { %1377 = vadd.xlane.f32.xlu2 %v3707_v5  ;;  %v3725_v7 = vadd.f32 %v3478_v29, %v1354_v32  ;;  %v1347_v40 = vmul.f32 %v3445_v42, %v1336_v35  ;;  %v1190_v8 = vmul.f32 %v1152_v49, %v3472_v51  ;;  %v1212_v21 = vadd.s32 %v3293_v36, %v1201_v52 }
 0x263   : > { %v1319_v11 = vadd.f32 %v1311_v54, %v1283_v1  ;;  %v2033_v22 = vadd.s32 4294967295, %v1211_v39  ;;  %v1177_v47 = vsel %vm1176_vm7, %v3571_v0, %v1173_v33  ;;  %v1202_v4 = vadd.s32 64, %v3291_v45 }
 0x264   : > { %1379 = vadd.xlane.f32.xlu0 %v3725_v7  ;;  %v1191_v44 = vmul.f32 %v1167_v28, %v3347_v30  ;;  %v2034_v50 = vadd.s32 4294967295, %v1212_v21  ;;  %v1182_v63 = vsel %vm3685_vm0, %v3564_v62, %v1177_v47  ;;  %v1284_v17 = vmul.f32 %v3376_v46, %v1273_v59 }
 0x265   : > { %v1355_v24 = vadd.f32 %v1347_v40, %v1319_v11  ;;  %vm1229_vm3 = vcmp.ge.s32.totalorder %v2033_v22, 0  ;;  %vm1238_vm4 = vcmp.lt.s32.totalorder %v2033_v22, 200  ;;  %v1192_v51 = vmul.f32 %v1182_v63, %v3312_v48 }
 0x266   : > { %vm1230_vm11 = vcmp.ge.s32.totalorder %v2034_v50, 0  ;;  %vm1239_vm12 = vcmp.lt.s32.totalorder %v2034_v50, 200  ;;  %vm1247_vm13 = vmand %vm1229_vm3, %vm1238_vm4  ;;  %v1213_v0 = vadd.s32 %v3293_v36, %v1202_v4 }
 0x267   : > { %v3740_v55 = vadd.f32 %v3478_v29, %v1355_v24  ;;  %vm1248_vm14 = vmand %vm1230_vm11, %vm1239_vm12  ;;  %v1274_v30 = vsel %vm1247_vm13, %v1190_v8, 0.0 }
 0x268   : > { %v1275_v38 = vsel %vm1248_vm14, %v1191_v44, 0.0  ;;  %v1293_v19 = vrot.slane %v1274_v30, 1  ;;  %v1329_v2 = vrot.slane %v1274_v30, 2  ;;  %v2035_v25 = vadd.s32 4294967295, %v1213_v0 }
 0x269   : > { %1381 = vadd.xlane.f32.xlu1 %v3740_v55  ;;  %v1294_v62 = vrot.slane %v1275_v38, 1  ;;  %v1330_v61 = vrot.slane %v1275_v38, 2  ;;  %v1286_v48 = vmul.f32 %v3376_v46, %v1275_v38  ;;  %v1285_v43 = vmul.f32 %v3376_v46, %v1274_v30 }
 0x26a   : > { %v1299_v6 = vsel %vm1296_vm8, %v1292_v53, %v1293_v19  ;;  %v1335_v36 = vsel %vm1332_vm10, %v1328_v26, %v1329_v2  ;;  %vm1231_vm15 = vcmp.ge.s32.totalorder %v2035_v25, 0  ;;  %vm1240_vm0 = vcmp.lt.s32.totalorder %v2035_v25, 200 }
 0x26b   : > { %v1298_v41 = vsel %vm1296_vm8, %v1293_v19, %v1294_v62  ;;  %v1334_v14 = vsel %vm1332_vm10, %v1329_v2, %v1330_v61  ;;  %v1312_v16 = vmul.f32 %v3418_v12, %v1299_v6  ;;  %v1348_v15 = vmul.f32 %v3445_v42, %v1335_v36  ;;  %vm1249_vm1 = vmand %vm1231_vm15, %vm1240_vm0 }
 0x26c   : > { %v1313_v10 = vmul.f32 %v3418_v12, %v1298_v41  ;;  %v1349_v27 = vmul.f32 %v3445_v42, %v1334_v14  ;;  %v1276_v57 = vsel %vm1249_vm1, %v1192_v51, 0.0  ;;  %v1761_v14 = vld [vmem:[#allocation11 + $0x70] sm:$0xff] }
 0x26d   : > { %v1320_v13 = vadd.f32 %v1312_v16, %v1284_v17  ;;  %v1295_v56 = vrot.slane %v1276_v57, 1  ;;  %v1331_v33 = vrot.slane %v1276_v57, 2 }
 0x26e   : > { %v1321_v23 = vadd.f32 %v1313_v10, %v1285_v43  ;;  %v1760_v43 = vld [vmem:[#allocation11 + $0x68] sm:$0xff] }
 0x26f   : > { %v1356_v31 = vadd.f32 %v1348_v15, %v1320_v13  ;;  %v1297_v46 = vsel %vm1296_vm8, %v1294_v62, %v1295_v56  ;;  %v1333_v1 = vsel %vm1332_vm10, %v1330_v61, %v1331_v33  ;;  %v1759_v15 = vld [vmem:[#allocation11 + $0x60] sm:$0xff]  ;;  %v1758_v56 = vld [vmem:[#allocation11 + $0x58] sm:$0xff] }
 0x270   : > { %v1357_v58 = vadd.f32 %v1349_v27, %v1321_v23  ;;  %v1314_v34 = vmul.f32 %v3418_v12, %v1297_v46  ;;  %v1350_v53 = vmul.f32 %v3445_v42, %v1333_v1  ;;  %v1757_v46 = vld [vmem:[#allocation11 + $0x50] sm:$0xff] }
 0x271   : > { %v1368_v59 = vadd.f32 %v3478_v29, %v1356_v31 }
 0x272   : > { %v1369_v37 = vadd.f32 %v3478_v29, %v1357_v58  ;;  %v1322_v26 = vadd.f32 %v1314_v34, %v1286_v48  ;;  %v1762_v48 = vld [vmem:[#allocation11 + $0x78] sm:$0xff]  ;;  %v1756_v34 = vld [vmem:[#allocation11 + $0x48] sm:$0xff] }
 0x273   : > { %1383 = vadd.xlane.f32.xlu2 %v1368_v59  ;;  %1767 = vmatpush.msra.mxu2 %v1762_v48 }
 0x274   : > { %1385 = vadd.xlane.f32.xlu1 %v1369_v37  ;;  %v1358_v18 = vadd.f32 %v1350_v53, %v1322_v26 }
 0x275   : > { %1768 = vmatpush.msra.mxu2 %v1761_v14 }
 0x276   : > { %v1370_v3 = vadd.f32 %v3478_v29, %v1358_v18 }
 0x277   : > { %1769 = vmatpush.msra.mxu2 %v1760_v43 }
 0x279   : > { %1770 = vmatpush.msra.mxu2 %v1759_v15 }
 0x27b   : > { %1771 = vmatpush.msra.mxu2 %v1758_v56 }
 0x27d   : > { %1772 = vmatpush.msra.mxu2 %v1757_v46 }
 0x27f   : > { %1773 = vmatpush.msra.mxu2 %v1756_v34 }
 0x2bb   : > { %v1374_v52 = vpop.xlane.xlu0 %1373 }
 0x2bc   : > { %v1389_v32 = vmul.f32 0.015625, %v1374_v52  ;;  %v1755_v52 = vld [vmem:[#allocation11 + $0x40] sm:$0xff] }
 0x2bd   : > { %1774 = vmatpush.msra.mxu2 %v1755_v52 }
 0x2be   : > { %v3768_v60 = vsub.f32 %v3522_v9, %v1389_v32  ;;  %v1429_v0 = vmul.f32 64.0, %v1389_v32 }
 0x2c0   : > { %v1405_v45 = vmul.f32 %v3768_v60, %v3768_v60 }
 0x2c2   : > { %1413 = vadd.xlane.f32.xlu0 %v1405_v45 }
 0x2c8   : > { %v1376_v35 = vpop.xlane.xlu1 %1375 }
 0x2c9   : > { %v1390_v54 = vmul.f32 0.015625, %v1376_v35 }
 0x2ca   : > { %1387 = vadd.xlane.f32.xlu0 %v1370_v3 }
 0x2cb   : > { %v3773_v12 = vsub.f32 %v3641_v20, %v1390_v54  ;;  %v1430_v62 = vmul.f32 64.0, %v1390_v54 }
 0x2cd   : > { %v1406_v42 = vmul.f32 %v3773_v12, %v3773_v12  ;;  %v1438_v6 = vmul.f32 %v1430_v62, %v1390_v54  ;;  %v1751_v62 = vld [vmem:[#allocation11 + $0x20] sm:$0xff] }
 0x2cf   : > { %1415 = vadd.xlane.f32.xlu2 %v1406_v42 }
 0x2d5   : > { %v1378_v29 = vpop.xlane.xlu2 %1377 }
 0x2d6   : > { %v3777_v49 = vmul.f32 0.015625, %v1378_v29  ;;  %v1754_v29 = vld [vmem:[#allocation11 + $0x38] sm:$0xff] }
 0x2d7   : > { %v1380_v28 = vpop.xlane.xlu0 %1379  ;;  %1775 = vmatpush.msra.mxu2 %v1754_v29 }
 0x2d8   : > { %v3781_v9 = vsub.f32 %v3707_v5, %v3777_v49  ;;  %v3783_v39 = vmul.f32 0.015625, %v1380_v28  ;;  %v1431_v31 = vmul.f32 64.0, %v3777_v49 }
 0x2da   : > { %v1407_v40 = vmul.f32 %v3781_v9, %v3781_v9  ;;  %v3789_v20 = vsub.f32 %v3725_v7, %v3783_v39 }
 0x2dc   : > { %1417 = vadd.xlane.f32.xlu1 %v1407_v40  ;;  %v1408_v8 = vmul.f32 %v3789_v20, %v3789_v20  ;;  %v1382_v21 = vpop.xlane.xlu1 %1381 }
 0x2dd   : > { %v3793_v11 = vmul.f32 0.015625, %v1382_v21  ;;  %v1753_v21 = vld [vmem:[#allocation11 + $0x30] sm:$0xff] }
 0x2de   : > { %1419 = vadd.xlane.f32.xlu2 %v1408_v8  ;;  %1776 = vmatpush.msra.mxu2 %v1753_v21 }
 0x2df   : > { %v3797_v5 = vsub.f32 %v3740_v55, %v3793_v11  ;;  %v1437_v55 = vmul.f32 %v1429_v0, %v1389_v32  ;;  %v1433_v45 = vmul.f32 64.0, %v3793_v11 }
 0x2e1   : > { %v1409_v22 = vmul.f32 %v3797_v5, %v3797_v5 }
 0x2e3   : > { %1421 = vadd.xlane.f32.xlu0 %v1409_v22 }
 0x2e6   : > { %v1384_v47 = vpop.xlane.xlu2 %1383 }
 0x2e7   : > { %v1386_v4 = vpop.xlane.xlu1 %1385  ;;  %v3801_v7 = vmul.f32 0.015625, %v1384_v47  ;;  %v3835_v47 = vld [vmem:[%s4149_s30] ss:$0 sm:$0xff]  ;;  %s1831_s30 = sshll.u32 %s3974_s10, 4  ;;  %s1832_s30 = int_to_ptr.vmem [resolvable:$true] %s1831_s30 }
 0x2e8   : > { %v3803_v44 = vmul.f32 0.015625, %v1386_v4 }
 0x2e9   : > { %v3806_v50 = vsub.f32 %v1368_v59, %v3801_v7  ;;  %v1432_v59 = vmul.f32 64.0, %v3783_v39  ;;  %v1434_v14 = vmul.f32 64.0, %v3801_v7 }
 0x2ea   : > { %v3809_v63 = vsub.f32 %v1369_v37, %v3803_v44  ;;  %v1439_v37 = vmul.f32 %v1431_v31, %v3777_v49 }
 0x2eb   : > { %v1410_v24 = vmul.f32 %v3806_v50, %v3806_v50 }
 0x2ec   : > { %v1411_v51 = vmul.f32 %v3809_v63, %v3809_v63 }
 0x2ed   : > { %1423 = vadd.xlane.f32.xlu1 %v1410_v24 }
 0x2ee   : > { %1425 = vadd.xlane.f32.xlu2 %v1411_v51 }
 0x335   : > { %v1414_v30 = vpop.xlane.xlu0 %1413 }
 0x336   : > { %v1445_v38 = vsub.f32 %v1414_v30, %v1437_v55  ;;  %v1752_v55 = vld [vmem:[#allocation11 + $0x28] sm:$0xff] }
 0x337   : > { %1777 = vmatpush.msra.mxu2 %v1752_v55 }
 0x338   : > { %v1453_v19 = vmul.f32 0.015625, %v1445_v38 }
 0x339   : > { %1778 = vmatpush.msra.mxu2 %v1751_v62 }
 0x33a   : > { %v1461_v2 = vmax.f32 %v1453_v19, 0.0 }
 0x33c   : > { %v1469_v61 = vadd.f32 1e-05, %v1461_v2 }
 0x33d   : > { %v1388_v25 = vpop.xlane.xlu0 %1387 }
 0x33e   : > { %2297 = vrsqrt.f32 %v1469_v61  ;;  %v3815_v36 = vmul.f32 0.015625, %v1388_v25  ;;  %vm1483_vm10 = vweird.f32 %v1469_v61  ;;  %v1750_v25 = vld [vmem:[#allocation11 + $0x18] sm:$0xff] }
 0x33f   : > { %1779 = vmatpush.msra.mxu2 %v1750_v25 }
 0x340   : > { %v3818_v16 = vsub.f32 %v1370_v3, %v3815_v36  ;;  %v1440_v3 = vmul.f32 %v1432_v59, %v3783_v39  ;;  %v1441_v39 = vmul.f32 %v1433_v45, %v3793_v11  ;;  %v3843_v11 = vld [vmem:[%s4150_s9] ss:$0 sm:$0xff]  ;;  %s2546_s9 = sshra.s32 %s1834_s5, 4  ;;  %s2547_s9 = int_to_ptr.hbm [resolvable:$true] %s2546_s9 }
 0x341   : > { %s2548_s3 = scalar_lea.hbm %s2547_s9, 64  ;;  %p2553_p2 = scmp.lt.s32.totalorder %s2547_s9, %s4158_s27 }
 0x342   : > { %v1416_v41 = vpop.xlane.xlu2 %1415  ;;  %v1412_v13 = vmul.f32 %v3818_v16, %v3818_v16  ;;  %p2549_p6 = scmp.ne.s32.totalorder %s2547_s9, %s2548_s3 }
 0x343   : > { %v1446_v17 = vsub.f32 %v1416_v41, %v1438_v6 }
 0x344   : > { %v2298_v23 = vpop.eup %2297  ;;  %1427 = vadd.xlane.f32.xlu0 %v1412_v13  ;;  %v1748_v13 = vld [vmem:[#allocation11 + $0x8] sm:$0xff]  ;;  %p2550_p13 = pnand %p2549_p6, %p2887_p4 }
 0x345   : > { %v1454_v10 = vmul.f32 0.015625, %v1446_v17  ;;  %v1478_v57 = vmul.f32 %v2298_v23, %v1469_v61  ;;  %vm1484_vm8 = vweird.f32 %v2298_v23 }
 0x346   : > { %vm1485_vm2 = vmor %vm1483_vm10, %vm1484_vm8  ;;  %p2551_p0 = pneg %p2550_p13 }
 0x347   : > { %v1462_v27 = vmax.f32 %v1454_v10, 0.0  ;;  %v1479_v58 = vmul.f32 %v2298_v23, %v1478_v57  ;;  %v1435_v10 = vmul.f32 64.0, %v3803_v44  ;;  %v1747_v57 = vld [vmem:[#allocation11] sm:$0xff] }
 0x349   : > { %v3823_v33 = vadd.f32 1e-05, %v1462_v27  ;;  %v1480_v1 = vmul.f32 0.5, %v1479_v58  ;;  %v1442_v58 = vmul.f32 %v1434_v14, %v3801_v7  ;;  %v1443_v46 = vmul.f32 %v1435_v10, %v3803_v44 }
 0x34b   : > { %2299 = vrsqrt.f32 %v3823_v33  ;;  %v1481_v26 = vsub.f32 1.5, %v1480_v1  ;;  %vm1493_vm6 = vweird.f32 %v3823_v33 }
 0x34d   : > { %v1482_v35 = vmul.f32 %v2298_v23, %v1481_v26 }
 0x34f   : > { %v1418_v53 = vpop.xlane.xlu1 %1417  ;;  %v1486_v22 = vsel %vm1485_vm2, %v2298_v23, %v1482_v35 }
 0x350   : > { %v1447_v18 = vsub.f32 %v1418_v53, %v1439_v37  ;;  %v1557_v30 = vmul.f32 %v1486_v22, %v3768_v60  ;;  %v1749_v60 = vld [vmem:[#allocation11 + $0x10] sm:$0xff] }
 0x351   : > { %v1420_v32 = vpop.xlane.xlu2 %1419  ;;  %v2300_v28 = vpop.eup %2299  ;;  %1780 = vmatpush.msra.mxu2 %v1749_v60 }
 0x352   : > { %v1455_v54 = vmul.f32 0.015625, %v1447_v18  ;;  %v1448_v42 = vsub.f32 %v1420_v32, %v1440_v3  ;;  %v1488_v49 = vmul.f32 %v2300_v28, %v3823_v33  ;;  %v1568_v48 = vmul.f32 %v3835_v47, %v1557_v30 }
 0x353   : > { %vm1494_vm5 = vweird.f32 %v2300_v28  ;;  %1781 = vmatpush.msra.mxu2 %v1748_v13 }
 0x354   : > { %v1463_v40 = vmax.f32 %v1455_v54, 0.0  ;;  %v1456_v8 = vmul.f32 0.015625, %v1448_v42  ;;  %v1489_v4 = vmul.f32 %v2300_v28, %v1488_v49  ;;  %v3852_v17 = vadd.f32 %v3843_v11, %v1568_v48  ;;  %vm1495_vm9 = vmor %vm1493_vm6, %vm1494_vm5 }
 0x355   : > { %1782 = vmatpush.msra.mxu2 %v1747_v57 }
 0x356   : > { %v3837_v24 = vadd.f32 1e-05, %v1463_v40  ;;  %v1464_v51 = vmax.f32 %v1456_v8, 0.0  ;;  %v1422_v0 = vpop.xlane.xlu0 %1421  ;;  %v1490_v19 = vmul.f32 0.5, %v1489_v4  ;;  %v2036_v23 = vmul.f32 -1.442695, %v3852_v17 }
 0x357   : > { %v1449_v38 = vsub.f32 %v1422_v0, %v1441_v39 }
 0x358   : > { %2301 = vrsqrt.f32 %v3837_v24  ;;  %v3846_v2 = vadd.f32 1e-05, %v1464_v51  ;;  %v1491_v6 = vsub.f32 1.5, %v1490_v19  ;;  %vm1503_vm4 = vweird.f32 %v3837_v24 }
 0x359   : > { %v1457_v61 = vmul.f32 0.015625, %v1449_v38 }
 0x35a   : > { %2303 = vrsqrt.f32 %v3846_v2  ;;  %v1492_v43 = vmul.f32 %v2300_v28, %v1491_v6  ;;  %vm1513_vm12 = vweird.f32 %v3846_v2 }
 0x35b   : > { %v1465_v41 = vmax.f32 %v1457_v61, 0.0 }
 0x35c   : > { %v1496_v31 = vsel %vm1495_vm9, %v2300_v28, %v1492_v43 }
 0x35d   : > { %v3856_v15 = vadd.f32 1e-05, %v1465_v41  ;;  %v1558_v1 = vmul.f32 %v1496_v31, %v3773_v12 }
 0x35e   : > { %v2302_v27 = vpop.eup %2301 }
 0x35f   : > { %v1498_v56 = vmul.f32 %v2302_v27, %v3837_v24  ;;  %2305 = vrsqrt.f32 %v3856_v15  ;;  %v1569_v3 = vmul.f32 %v3835_v47, %v1558_v1  ;;  %vm1504_vm7 = vweird.f32 %v2302_v27 }
 0x360   : > { %v2304_v33 = vpop.eup %2303  ;;  %v1424_v59 = vpop.xlane.xlu1 %1423  ;;  %2307 = vpow2.f32 %v2036_v23  ;;  %vm1505_vm11 = vmor %vm1503_vm4, %vm1504_vm7  ;;  %vm1523_vm15 = vweird.f32 %v3856_v15 }
 0x361   : > { %v1499_v37 = vmul.f32 %v2302_v27, %v1498_v56  ;;  %v1508_v34 = vmul.f32 %v2304_v33, %v3846_v2  ;;  %v1450_v53 = vsub.f32 %v1424_v59, %v1442_v58  ;;  %v1426_v26 = vpop.xlane.xlu2 %1425  ;;  %v3867_v35 = vadd.f32 %v3843_v11, %v1569_v3 }
 0x362   : > { %v1451_v18 = vsub.f32 %v1426_v26, %v1443_v46  ;;  %vm1514_vm3 = vweird.f32 %v2304_v33 }
 0x363   : > { %v1500_v52 = vmul.f32 0.5, %v1499_v37  ;;  %v1509_v32 = vmul.f32 %v2304_v33, %v1508_v34  ;;  %v1458_v7 = vmul.f32 0.015625, %v1450_v53  ;;  %v2037_v40 = vmul.f32 -1.442695, %v3867_v35  ;;  %vm1515_vm13 = vmor %vm1513_vm12, %vm1514_vm3 }
 0x364   : > { %v1459_v45 = vmul.f32 0.015625, %v1451_v18 }
 0x365   : > { %v3869_v44 = vpop.eup %2305  ;;  %v1501_v54 = vsub.f32 1.5, %v1500_v52  ;;  %v1510_v12 = vmul.f32 0.5, %v1509_v32  ;;  %v1466_v42 = vmax.f32 %v1458_v7, 0.0  ;;  %2309 = vpow2.f32 %v2037_v40 }
 0x366   : > { %v2308_v29 = vpop.eup %2307  ;;  %v1518_v28 = vmul.f32 %v3869_v44, %v3856_v15  ;;  %v1467_v49 = vmax.f32 %v1459_v45, 0.0  ;;  %vm1524_vm14 = vweird.f32 %v3869_v44 }
 0x367   : > { %v1502_v8 = vmul.f32 %v2302_v27, %v1501_v54  ;;  %v1511_v21 = vsub.f32 1.5, %v1510_v12  ;;  %v1474_v39 = vadd.f32 1e-05, %v1466_v42  ;;  %v3874_v22 = vadd.f32 1.0, %v2308_v29  ;;  %vm1525_vm8 = vmor %vm1523_vm15, %vm1524_vm14 }
 0x368   : > { %v1519_v4 = vmul.f32 %v3869_v44, %v1518_v28  ;;  %v3878_v51 = vadd.f32 1e-05, %v1467_v49 }
 0x369   : > { %v1512_v0 = vmul.f32 %v2304_v33, %v1511_v21  ;;  %2311 = vrsqrt.f32 %v1474_v39  ;;  %v1506_v30 = vsel %vm1505_vm11, %v2302_v27, %v1502_v8  ;;  %vm1533_vm0 = vweird.f32 %v1474_v39 }
 0x36a   : > { %v1520_v55 = vmul.f32 0.5, %v1519_v4  ;;  %2313 = vrsqrt.f32 %v3878_v51  ;;  %v1559_v19 = vmul.f32 %v1506_v30, %v3781_v9  ;;  %vm1624_vm1 = vweird.f32 %v3874_v22 }
 0x36b   : > { %2315 = vrcp.f32 %v3874_v22  ;;  %v1516_v24 = vsel %vm1515_vm13, %v2304_v33, %v1512_v0  ;;  %v2310_v61 = vpop.eup %2309  ;;  %v1628_v57 = vand.u32 2147483647, %v3874_v22  ;;  %v1630_v33 = vand.u32 2147483648, %v3874_v22 }
 0x36c   : > { %v1521_v38 = vsub.f32 1.5, %v1520_v55  ;;  %v1560_v62 = vmul.f32 %v1516_v24, %v3789_v20  ;;  %v1570_v25 = vmul.f32 %v3835_v47, %v1559_v19  ;;  %v3890_v6 = vadd.f32 1.0, %v2310_v61 }
 0x36d   : > { %vm1543_vm5 = vweird.f32 %v3878_v51  ;;  %vm1629_vm7 = vcmp.eq.f32.partialorder %v1628_v57, 8.507059e+37  ;;  %v1631_v45 = vor.u32 1.1754944e-38, %v1630_v33 }
 0x36e   : > { %v1571_v2 = vmul.f32 %v3835_v47, %v1560_v62  ;;  %v1522_v41 = vmul.f32 %v3869_v44, %v1521_v38  ;;  %v3896_v43 = vadd.f32 %v3843_v11, %v1570_v25  ;;  %2317 = vrcp.f32 %v3890_v6 }
 0x36f   : > { %v2312_v48 = vpop.eup %2311  ;;  %v1645_v28 = vand.u32 2147483648, %v3890_v6  ;;  %vm1639_vm12 = vweird.f32 %v3890_v6 }
 0x370   : > { %v3892_v60 = vpop.eup %2313  ;;  %v1528_v14 = vmul.f32 %v2312_v48, %v1474_v39  ;;  %v3899_v9 = vadd.f32 %v3843_v11, %v1571_v2  ;;  %v2038_v15 = vmul.f32 -1.442695, %v3896_v43  ;;  %v1526_v59 = vsel %vm1525_vm8, %v3869_v44, %v1522_v41 }
 0x371   : > { %v2316_v20 = vpop.eup %2315  ;;  %v1538_v10 = vmul.f32 %v3892_v60, %v3878_v51  ;;  %vm1534_vm10 = vweird.f32 %v2312_v48  ;;  %v1561_v1 = vmul.f32 %v1526_v59, %v3797_v5  ;;  %vm1544_vm6 = vweird.f32 %v3892_v60 }
 0x372   : > { %v1529_v13 = vmul.f32 %v2312_v48, %v1528_v14  ;;  %v1620_v23 = vmul.f32 %v2316_v20, %v3874_v22  ;;  %v2039_v31 = vmul.f32 -1.442695, %v3899_v9  ;;  %2319 = vpow2.f32 %v2038_v15  ;;  %vm3920_vm9 = vmor %vm1533_vm0, %vm1534_vm10 }
 0x373   : > { %v1539_v27 = vmul.f32 %v3892_v60, %v1538_v10  ;;  %vm1625_vm2 = vweird.f32 %v2316_v20  ;;  %v1572_v18 = vmul.f32 %v3835_v47, %v1561_v1  ;;  %v1643_v44 = vand.u32 2147483647, %v3890_v6  ;;  %vm3932_vm4 = vmor %vm1543_vm5, %vm1544_vm6 }
 0x374   : > { %v1530_v56 = vmul.f32 0.5, %v1529_v13  ;;  %v1621_v58 = vsub.f32 1.0, %v1620_v23  ;;  %2321 = vpow2.f32 %v2039_v31  ;;  %v2318_v53 = vpop.eup %2317  ;;  %vm1626_vm3 = vmor %vm1624_vm1, %vm1625_vm2 }
 0x375   : > { %v1540_v46 = vmul.f32 0.5, %v1539_v27  ;;  %v1635_v5 = vmul.f32 %v2318_v53, %v3890_v6  ;;  %v3930_v54 = vadd.f32 %v3843_v11, %v1572_v18  ;;  %vm1640_vm11 = vweird.f32 %v2318_v53 }
 0x376   : > { %v1531_v37 = vsub.f32 1.5, %v1530_v56  ;;  %v1622_v34 = vmul.f32 %v2316_v20, %v1621_v58  ;;  %vm1641_vm13 = vmor %vm1639_vm12, %vm1640_vm11  ;;  %vm1644_vm14 = vcmp.eq.f32.partialorder %v1643_v44, 8.507059e+37 }
 0x377   : > { %v1541_v26 = vsub.f32 1.5, %v1540_v46  ;;  %v1636_v29 = vsub.f32 1.0, %v1635_v5  ;;  %v2040_v21 = vmul.f32 -1.442695, %v3930_v54 }
 0x378   : > { %v1532_v3 = vmul.f32 %v2312_v48, %v1531_v37  ;;  %v1623_v32 = vadd.f32 %v2316_v20, %v1622_v34  ;;  %v2320_v40 = vpop.eup %2319 }
 0x379   : > { %v1542_v7 = vmul.f32 %v3892_v60, %v1541_v26  ;;  %v1637_v0 = vmul.f32 %v2318_v53, %v1636_v29  ;;  %v1613_v55 = vadd.f32 1.0, %v2320_v40  ;;  %2323 = vpow2.f32 %v2040_v21 }
 0x37a   : > { %v1627_v42 = vsel %vm1626_vm3, %v2316_v20, %v1623_v32  ;;  %v1536_v49 = vsel %vm3920_vm9, %v2312_v48, %v1532_v3  ;;  %v2322_v4 = vpop.eup %2321 }
 0x37b   : > { %v1632_v8 = vsel %vm1629_vm7, %v1631_v45, %v1627_v42  ;;  %v1562_v39 = vmul.f32 %v1536_v49, %v3806_v50  ;;  %v1546_v22 = vsel %vm3932_vm4, %v3892_v60, %v1542_v7  ;;  %v1614_v30 = vadd.f32 1.0, %v2322_v4 }
 0x37c   : > { %v1739_v51 = vmul.f32 %v1632_v8, %v3852_v17  ;;  %v1563_v38 = vmul.f32 %v1546_v22, %v3809_v63  ;;  %v1638_v19 = vadd.f32 %v2318_v53, %v1637_v0  ;;  %2325 = vrcp.f32 %v1613_v55 }
 0x37d   : > { %v1573_v24 = vmul.f32 %v3835_v47, %v1562_v39  ;;  %v1646_v50 = vor.u32 1.1754944e-38, %v1645_v28  ;;  %2327 = vrcp.f32 %v1614_v30  ;;  %v1660_v27 = vand.u32 2147483648, %v1613_v55 }
 0x37e   : > { %1783 = vmatmul.f32.vlgmr.msra.gmra.mxu2 %v1739_v51  ;;  %v1642_v62 = vsel %vm1641_vm13, %v2318_v53, %v1638_v19  ;;  %v1574_v25 = vmul.f32 %v3835_v47, %v1563_v38  ;;  %v1658_v15 = vand.u32 2147483647, %v1613_v55  ;;  %vm1654_vm0 = vweird.f32 %v1613_v55 }
 0x37f   : > { %v3949_v17 = vadd.f32 %v3843_v11, %v1573_v24  ;;  %v1647_v61 = vsel %vm1644_vm14, %v1646_v50, %v1642_v62  ;;  %v2324_v48 = vpop.eup %2323  ;;  %vm1669_vm1 = vweird.f32 %v1614_v30  ;;  %v1661_v46 = vor.u32 1.1754944e-38, %v1660_v27 }
 0x380   : > { %v1740_v2 = vmul.f32 %v1647_v61, %v3867_v35  ;;  %v3955_v60 = vadd.f32 %v3843_v11, %v1574_v25  ;;  %v1615_v41 = vadd.f32 1.0, %v2324_v48  ;;  %v1673_v37 = vand.u32 2147483647, %v1614_v30 }
 0x381   : > { %v2041_v63 = vmul.f32 -1.442695, %v3949_v17  ;;  %v1675_v34 = vand.u32 2147483648, %v1614_v30  ;;  %vm1659_vm2 = vcmp.eq.f32.partialorder %v1658_v15, 8.507059e+37 }
 0x382   : > { %v2326_v6 = vpop.eup %2325  ;;  %v2042_v10 = vmul.f32 -1.442695, %v3955_v60  ;;  %vm1674_vm6 = vcmp.eq.f32.partialorder %v1673_v37, 8.507059e+37  ;;  %v1690_v28 = vand.u32 2147483648, %v1615_v41  ;;  %vm1684_vm7 = vweird.f32 %v1615_v41 }
 0x383   : > { %2329 = vpow2.f32 %v2041_v63  ;;  %v2328_v14 = vpop.eup %2327  ;;  %v1650_v20 = vmul.f32 %v2326_v6, %v1613_v55  ;;  %vm1655_vm15 = vweird.f32 %v2326_v6  ;;  %v1676_v7 = vor.u32 1.1754944e-38, %v1675_v34 }
 0x384   : > { %v1665_v13 = vmul.f32 %v2328_v14, %v1614_v30  ;;  %2331 = vrcp.f32 %v1615_v41  ;;  %vm1670_vm8 = vweird.f32 %v2328_v14  ;;  %vm1656_vm10 = vmor %vm1654_vm0, %vm1655_vm15  ;;  %v1688_v8 = vand.u32 2147483647, %v1615_v41 }
 0x385   : > { %v1651_v23 = vsub.f32 1.0, %v1650_v20  ;;  %2333 = vpow2.f32 %v2042_v10  ;;  %vm1671_vm5 = vmor %vm1669_vm1, %vm1670_vm8  ;;  %v1691_v22 = vor.u32 1.1754944e-38, %v1690_v28  ;;  %v1436_v20 = vmul.f32 64.0, %v3815_v36 }
 0x386   : > { %1786 = vmatmul.f32.gmra.mxu2 %v1740_v2  ;;  %v1666_v35 = vsub.f32 1.0, %v1665_v13  ;;  %vm1689_vm4 = vcmp.eq.f32.partialorder %v1688_v8, 8.507059e+37 }
 0x387   : > { %v1652_v57 = vmul.f32 %v2326_v6, %v1651_v23  ;;  %v1444_v10 = vmul.f32 %v1436_v20, %v3815_v36 }
 0x388   : > { %v1667_v56 = vmul.f32 %v2328_v14, %v1666_v35 }
 0x389   : > { %v2330_v31 = vpop.eup %2329  ;;  %v1653_v58 = vadd.f32 %v2326_v6, %v1652_v57 }
 0x38a   : > { %v1616_v33 = vadd.f32 1.0, %v2330_v31  ;;  %v2332_v59 = vpop.eup %2331  ;;  %v1668_v1 = vadd.f32 %v2328_v14, %v1667_v56 }
 0x38b   : > { %v2334_v53 = vpop.eup %2333  ;;  %v1657_v26 = vsel %vm1656_vm10, %v2326_v6, %v1653_v58  ;;  %v1680_v18 = vmul.f32 %v2332_v59, %v1615_v41  ;;  %vm1685_vm9 = vweird.f32 %v2332_v59 }
 0x38c   : > { %2335 = vrcp.f32 %v1616_v33  ;;  %v1662_v3 = vsel %vm1659_vm2, %v1661_v46, %v1657_v26  ;;  %v1672_v32 = vsel %vm1671_vm5, %v2328_v14, %v1668_v1  ;;  %v1617_v45 = vadd.f32 1.0, %v2334_v53  ;;  %vm1686_vm3 = vmor %vm1684_vm7, %vm1685_vm9 }
 0x38d   : > { %v1741_v52 = vmul.f32 %v1662_v3, %v3896_v43  ;;  %v1681_v5 = vsub.f32 1.0, %v1680_v18  ;;  %v1677_v12 = vsel %vm1674_vm6, %v1676_v7, %v1672_v32  ;;  %v1705_v30 = vand.u32 2147483648, %v1616_v33 }
 0x38e   : > { %2337 = vrcp.f32 %v1617_v45  ;;  %v1742_v40 = vmul.f32 %v1677_v12, %v3899_v9  ;;  %vm1699_vm12 = vweird.f32 %v1616_v33  ;;  %v1703_v38 = vand.u32 2147483647, %v1616_v33 }
 0x38f   : > { %1789 = vmatmul.f32.gmra.mxu2 %v1741_v52  ;;  %v1682_v44 = vmul.f32 %v2332_v59, %v1681_v5  ;;  %v1706_v50 = vor.u32 1.1754944e-38, %v1705_v30  ;;  %v1720_v63 = vand.u32 2147483648, %v1617_v45  ;;  %vm1714_vm0 = vweird.f32 %v1617_v45 }
 0x390   : > { %vm1704_vm14 = vcmp.eq.f32.partialorder %v1703_v38, 8.507059e+37  ;;  %v1718_v48 = vand.u32 2147483647, %v1617_v45 }
 0x391   : > { %v1683_v29 = vadd.f32 %v2332_v59, %v1682_v44  ;;  %v1721_v6 = vor.u32 1.1754944e-38, %v1720_v63 }
 0x392   : > { %v2336_v42 = vpop.eup %2335  ;;  %vm1719_vm8 = vcmp.eq.f32.partialorder %v1718_v48, 8.507059e+37 }
 0x393   : > { %v1695_v49 = vmul.f32 %v2336_v42, %v1616_v33  ;;  %v1687_v21 = vsel %vm1686_vm3, %v2332_v59, %v1683_v29  ;;  %vm1700_vm11 = vweird.f32 %v2336_v42 }
 0x394   : > { %v2338_v39 = vpop.eup %2337  ;;  %v1692_v0 = vsel %vm1689_vm4, %v1691_v22, %v1687_v21  ;;  %vm1701_vm13 = vmor %vm1699_vm12, %vm1700_vm11 }
 0x395   : > { %v1696_v43 = vsub.f32 1.0, %v1695_v49  ;;  %v1710_v51 = vmul.f32 %v2338_v39, %v1617_v45  ;;  %v1743_v24 = vmul.f32 %v1692_v0, %v3930_v54  ;;  %vm1715_vm15 = vweird.f32 %v2338_v39  ;;  %v2242_v45 = vld [vmem:[%s4155_s14] ss:$0 sm:$0xff]  ;;  %s2552_s14 = scalar_lea.hbm %s4158_s27, 512 }
 0x396   : > { %vm1716_vm1 = vmor %vm1714_vm0, %vm1715_vm15  ;;  %p2554_p7 = scmp.lt.s32.totalorder %s2552_s14, %s2548_s3 }
 0x397   : > { %v1697_v4 = vmul.f32 %v2336_v42, %v1696_v43  ;;  %1792 = vmatmul.f32.gmra.mxu2 %v1742_v40  ;;  %v1711_v9 = vsub.f32 1.0, %v1710_v51 }
 0x398   : > { %p2555_p11 = por %p2554_p7, %p2553_p2 }
 0x399   : > { %v1698_v55 = vadd.f32 %v2336_v42, %v1697_v4  ;;  %v1712_v62 = vmul.f32 %v2338_v39, %v1711_v9 }
 0x39a   : > { %p2556_p12 = pnand %p2555_p11, %p2551_p0 }
 0x39b   : > { %v1702_v19 = vsel %vm1701_vm13, %v2336_v42, %v1698_v55  ;;  %v1713_v2 = vadd.f32 %v2338_v39, %v1712_v62 }
 0x39c   : > { %v1707_v61 = vsel %vm1704_vm14, %v1706_v50, %v1702_v19 }
 0x39d   : > { %v1744_v25 = vmul.f32 %v1707_v61, %v3949_v17  ;;  %v1717_v54 = vsel %vm1716_vm1, %v2338_v39, %v1713_v2 }
 0x39e   : > { %v1722_v41 = vsel %vm1719_vm8, %v1721_v6, %v1717_v54 }
 0x39f   : > { %1795 = vmatmul.f32.gmra.mxu2 %v1743_v24  ;;  %v1745_v14 = vmul.f32 %v1722_v41, %v3955_v60 }
 0x3a7   : > { %1798 = vmatmul.f32.gmra.mxu2 %v1744_v25 }
 0x3af   : > { %1801 = vmatmul.f32.gmra.mxu2 %v1745_v14 }
 0x3b7   : > { %v1428_v13 = vpop.xlane.xlu0 %1427 }
 0x3b8   : > { %v1452_v17 = vsub.f32 %v1428_v13, %v1444_v10 }
 0x3ba   : > { %v1460_v23 = vmul.f32 0.015625, %v1452_v17 }
 0x3bc   : > { %v1468_v27 = vmax.f32 %v1460_v23, 0.0 }
 0x3be   : > { %v1476_v35 = vadd.f32 1e-05, %v1468_v27 }
 0x3c0   : > { %2339 = vrsqrt.f32 %v1476_v35  ;;  %vm1553_vm2 = vweird.f32 %v1476_v35 }
 0x3c6   : > { %v2340_v57 = vpop.eup %2339 }
 0x3c7   : > { %v1548_v15 = vmul.f32 %v2340_v57, %v1476_v35  ;;  %vm1554_vm10 = vweird.f32 %v2340_v57 }
 0x3c8   : > { %vm1555_vm5 = vmor %vm1553_vm2, %vm1554_vm10 }
 0x3c9   : > { %v1549_v31 = vmul.f32 %v2340_v57, %v1548_v15 }
 0x3cb   : > { %v1550_v56 = vmul.f32 0.5, %v1549_v31 }
 0x3cd   : > { %v1551_v58 = vsub.f32 1.5, %v1550_v56 }
 0x3cf   : > { %v1552_v33 = vmul.f32 %v2340_v57, %v1551_v58 }
 0x3d1   : > { %v1556_v60 = vsel %vm1555_vm5, %v2340_v57, %v1552_v33 }
 0x3d2   : > { %v1564_v59 = vmul.f32 %v1556_v60, %v3818_v16 }
 0x3d4   : > { %v1575_v36 = vmul.f32 %v3835_v47, %v1564_v59 }
 0x3d6   : > { %v1586_v46 = vadd.f32 %v3843_v11, %v1575_v36 }
 0x3d8   : > { %v2043_v1 = vmul.f32 -1.442695, %v1586_v46 }
 0x3da   : > { %2341 = vpow2.f32 %v2043_v1 }
 0x3e0   : > { %v2342_v37 = vpop.eup %2341 }
 0x3e1   : > { %v1618_v34 = vadd.f32 1.0, %v2342_v37 }
 0x3e3   : > { %2343 = vrcp.f32 %v1618_v34  ;;  %v1735_v3 = vand.u32 2147483648, %v1618_v34  ;;  %v1733_v32 = vand.u32 2147483647, %v1618_v34  ;;  %vm1729_vm9 = vweird.f32 %v1618_v34 }
 0x3e5   : > { %v1736_v16 = vor.u32 1.1754944e-38, %v1735_v3  ;;  %vm1734_vm3 = vcmp.eq.f32.partialorder %v1733_v32, 8.507059e+37 }
 0x3e9   : > { %v2344_v53 = vpop.eup %2343 }
 0x3ea   : > { %v1725_v26 = vmul.f32 %v2344_v53, %v1618_v34  ;;  %vm1730_vm6 = vweird.f32 %v2344_v53 }
 0x3eb   : > { %vm1731_vm7 = vmor %vm1729_vm9, %vm1730_vm6 }
 0x3ec   : > { %v1726_v18 = vsub.f32 1.0, %v1725_v26 }
 0x3ee   : > { %v1727_v52 = vmul.f32 %v2344_v53, %v1726_v18 }
 0x3f0   : > { %v1728_v5 = vadd.f32 %v2344_v53, %v1727_v52 }
 0x3f2   : > { %v1732_v47 = vsel %vm1731_vm7, %v2344_v53, %v1728_v5 }
 0x3f3   : > { %v1737_v11 = vsel %vm1734_vm3, %v1736_v16, %v1732_v47 }
 0x3f4   : > { %v1746_v7 = vmul.f32 %v1737_v11, %v1586_v46 }
 0x3f6   : > { %1804 = vmatmul.f32.gmra.mxu2 %v1746_v7 }
 0x401   : > { %v1784_v44 = vpop.f32.mrf.mxu2 }
 0x402   : > { %v1785_v12 = vadd.f32 %v2242_v45, %v1784_v44 }
 0x404   : > { %1808 = vst [vmem:[%s3974_s10] sm:$0xff] %v1785_v12 }
 0x409   : > { %v1787_v42 = vpop.f32.mrf.mxu2 }
 0x40a   : > { %v1788_v29 = vadd.f32 %v2242_v45, %v1787_v42 }
 0x40c   : > { %1809 = vst [vmem:[%s3974_s10 + $0x8] sm:$0xff] %v1788_v29 }
 0x412   : > { %v1790_v28 = vpop.f32.mrf.mxu2 }
 0x413   : > { %v1791_v49 = vadd.f32 %v2242_v45, %v1790_v28 }
 0x415   : > { %1810 = vst [vmem:[%s3974_s10 + $0x10] sm:$0xff] %v1791_v49 }
 0x41a   : > { %v1793_v40 = vpop.f32.mrf.mxu2 }
 0x41b   : > { %v1794_v8 = vadd.f32 %v2242_v45, %v1793_v40 }
 0x41d   : > { %1811 = vst [vmem:[%s3974_s10 + $0x18] sm:$0xff] %v1794_v8 }
 0x422   : > { %v1796_v43 = vpop.f32.mrf.mxu2 }
 0x423   : > { %v1797_v21 = vadd.f32 %v2242_v45, %v1796_v43 }
 0x425   : > { %1812 = vst [vmem:[%s3974_s10 + $0x20] sm:$0xff] %v1797_v21 }
 0x42a   : > { %v1799_v39 = vpop.f32.mrf.mxu2 }
 0x42b   : > { %v1800_v22 = vadd.f32 %v2242_v45, %v1799_v39 }
 0x42d   : > { %1813 = vst [vmem:[%s3974_s10 + $0x28] sm:$0xff] %v1800_v22 }
 0x432   : > { %v1802_v4 = vpop.f32.mrf.mxu2 }
 0x433   : > { %v1803_v51 = vadd.f32 %v2242_v45, %v1802_v4 }
 0x435   : > { %1814 = vst [vmem:[%s3974_s10 + $0x30] sm:$0xff] %v1803_v51 }
 0x479   : > { %v1805_v0 = vpop.f32.mrf.mxu2 }
 0x47a   : > { %v1806_v55 = vadd.f32 %v2242_v45, %v1805_v0 }
 0x47c   : > { %1815 = vst [vmem:[%s3974_s10 + $0x38] sm:$0xff] %v1806_v55 }
 0x47d   : > { %2559 = shalt.err (!%p2556_p12)
}
 0x47e   : > { %s2683_s20 = smov 128   ;;  %s2684_s10 = smov 8  }
 0x47f   : > { %2106 = dma.vmem_to_hbm [thread:$0]  (%p2887_p4), %s1832_s30, 1024, %s1834_s5, %s1817_s16, %s2683_s20, %s2683_s20, %s2684_s10  }
 0x480 PF: > { %s4159_s25 = sld [smem:[#allocation21_spill]]  ;;  %p2133_p8 = scmp.ge.s32.totalorder %s2672_s23, 2 }
 0x482   : > { %p2122_p9 = pnand %p2133_p8, %p2898_p3 }
 0x484   : > { %p2123_p1 = pneg %p2122_p9 }
 0x486   : > { %s1848_s8 = sand.u32 1, %s4159_s25  }
 0x487   : > { %s1849_s13 = scalar_lea.sflag [#allocation4], %s1848_s8 }
 0x488   : > { %2625 = dma.done.wait (%p2123_p1), %s1849_s13, 1024  }
 0x489   : > { %2627 = vsyncadd (%p2123_p1), %s1849_s13, 4294966272  ;;  %s35_s23 = sadd.s32 1, %s2672_s23   ;;  %s4161_s29 = sld [smem:[#allocation20_spill]] }
 0x48a   : > { %p32_p10 = scmp.ge.s32.totalorder %s35_s23, 10   ;;  %s4162_s11 = sld [smem:[#allocation29_spill]] }
 0x48b   : > { %s4163_s28 = sld [smem:[#allocation28_spill]]  ;;  %s4167_s30 = smov %s2640_s15 }
 0x48c   : > { %s4164_s19 = sld [smem:[#allocation24_spill]]  ;;  %s4169_s16 = smov %s2648_s17 }
 0x48d   : > { %s4165_s21 = sld [smem:[#allocation26_spill]]  ;;  %s4170_s17 = smov %s2652_s18 }
 0x48e   : > { %s4166_s6 = sld [smem:[#allocation27_spill]]  ;;  %s4172_s20 = smov %s2668_s22 }
 0x490   : > { %s4168_s15 = smov %s4162_s11  ;;  %34 = sbr.rel (!%p32_p10) target bundleno = 24 (0x18), region = 150 }
 0x491   : > { %s4171_s18 = smov %s4163_s28 }
 0x494   : > { %s4173_s22 = smov %s4166_s6 }
 0x495   :  { %1855 = vsyncpa [#allocation3], 1 }
 0x496   :  { %1857 = vsyncpa [#allocation3 + $0x1], 1 }
 0x497   :  { %1858 = vsyncpa [#allocation6], 1 }
 0x498   :  { %1860 = vsyncpa [#allocation6 + $0x1], 1 }
 0x499   :  { %1861 = vsyncpa [#allocation9], 1 }
 0x49a   :  { %1862 = vsyncpa [#allocation12], 1 }
 0x49b   :  { %1863 = vsyncpa [#allocation4], 1 }
 0x49c   :  { %1865 = vsyncpa [#allocation4 + $0x1], 1 }

</bundles_post_ra>
